<compile_context>
chip_gen: v7x
topology: tpu7x:2x2x1
jax: 0.10.0
libtpu: 0.0.40
codegen_flags: <defaults>
</compile_context>

<pallas_src>
import jax
import jax.numpy as jnp
from jax.experimental import pallas as pl
from jax.experimental.pallas import tpu as pltpu


def _aux_head_kernel(x_ref, m_ref, b1_ref, w2_ref, b2_ref, wc_ref, bc_ref, o_ref):
    """Fused AuxHeadImageNet forward: three MXU matmuls + bias/ReLU epilogues.

    x_ref : [Bt, Kp]        bf16  NCHW input, flattened per row, zero-padded K
    m_ref : [Kp, 4*128]     bf16  fused (avgpool (x) conv1 * bn1-scale), zero-padded rows
    b1_ref: [1, 4*128]      f32   bn1 bias tiled over the 4 pooled positions
    w2_ref: [4*128, 768]    bf16  conv2 im2col weight * bn2-scale
    b2_ref: [1, 768]        f32   bn2 bias
    wc_ref: [768, Np]       bf16  classifier weight (transposed, zero-padded N)
    bc_ref: [1, Np]         f32   classifier bias (zero-padded)
    o_ref : [Bt, Np]        f32
    """
    # relu1 in bf16, then fused (avgpool -> 1x1 conv -> bn1 scale) as one matmul.
    h0 = jnp.maximum(x_ref[...], jnp.bfloat16(0.0))
    a1 = jnp.dot(h0, m_ref[...], preferred_element_type=jnp.float32)
    # bn1 bias + relu2.
    a1 = jnp.maximum(a1 + b1_ref[...], 0.0).astype(jnp.bfloat16)
    # conv2 (2x2 valid conv on the 2x2 map == one im2col matmul, bn2 scale folded).
    a2 = jnp.dot(a1, w2_ref[...], preferred_element_type=jnp.float32)
    # bn2 bias + relu3.
    a2 = jnp.maximum(a2 + b2_ref[...], 0.0).astype(jnp.bfloat16)
    # classifier (lane-dense padded N).
    out = jnp.dot(a2, wc_ref[...], preferred_element_type=jnp.float32) + bc_ref[...]
    o_ref[...] = out.astype(o_ref.dtype)


def _round_up(x, m):
    return ((x + m - 1) // m) * m


def aux_head_imagenet(x_nchw, conv1_w, bn1_gamma, bn1_beta, bn1_mean, bn1_var,
                      conv2_w, bn2_gamma, bn2_beta, bn2_mean, bn2_var,
                      fc_w, fc_b, *, eps=1e-5):
    """Forward pass of AuxHeadImageNet (eval-mode BatchNorm).

    x_nchw : [B, C_in, 7, 7]  (PyTorch NCHW layout)
    conv1_w: [128, C_in, 1, 1];  conv2_w: [768, 128, 2, 2]
    fc_w   : [classes, 768];     fc_b: [classes]
    Returns [B, classes].
    """
    B, C_in, H, W = x_nchw.shape
    assert H == 7 and W == 7, "AuxHeadImageNet expects a [B, C, 7, 7] input"
    C1 = conv1_w.shape[0]                       # 128
    C2, _, kh2, kw2 = conv2_w.shape             # 768, 128, 2, 2
    classes = fc_w.shape[0]

    K_POOL, S_POOL = 5, 2
    pool_h = (H - K_POOL) // S_POOL + 1         # 2
    pool_w = (W - K_POOL) // S_POOL + 1         # 2
    n_pos = pool_h * pool_w                     # 4
    assert pool_h == kh2 and pool_w == kw2, "conv2 must reduce the pooled map to 1x1"

    # ---------------- one-time weight preprocessing (wrapper / XLA side) -----------
    # Fold eval-mode BatchNorm into per-channel scale/bias, then fold the scales
    # into the conv weights so the kernel only applies bias + ReLU.
    # TODO(synk): BatchNorm uses eval-mode running statistics; training-mode
    # batch-statistics BN is not implemented.
    s1 = bn1_gamma / jnp.sqrt(bn1_var + eps)
    b1 = bn1_beta - bn1_mean * s1
    s2 = bn2_gamma / jnp.sqrt(bn2_var + eps)
    b2 = bn2_beta - bn2_mean * s2

    # AvgPool2d(5, stride=2, padding=0) on 7x7 -> 2x2, expressed as a [H*W, n_pos]
    # matrix. count_include_pad is irrelevant: padding=0, every window is in-bounds.
    u = jnp.arange(H)
    v = jnp.arange(W)
    cols = []
    for i in range(pool_h):
        for j in range(pool_w):
            mask = ((u[:, None] >= S_POOL * i) & (u[:, None] < S_POOL * i + K_POOL) &
                    (v[None, :] >= S_POOL * j) & (v[None, :] < S_POOL * j + K_POOL))
            cols.append(mask.reshape(H * W))
    P = jnp.stack(cols, axis=1).astype(jnp.float32) / float(K_POOL * K_POOL)  # [49, 4]

    # Fuse avgpool (linear) with the 1x1 conv (linear) + bn1 scale into one
    # [C_in*H*W, n_pos*C1] matrix: one lane-dense MXU matmul in the kernel instead
    # of a wasteful K=C_in matmul.
    w1s = conv1_w.reshape(C1, C_in) * s1[:, None]                     # [C1, C_in]
    M = jnp.einsum('wp,kc->cwpk', P, w1s).reshape(C_in * H * W, n_pos * C1)
    b1_t = jnp.tile(b1, n_pos).reshape(1, n_pos * C1).astype(jnp.float32)

    # conv2 (2x2 valid conv over the 2x2 map) == one im2col matmul
    # [B, n_pos*C1] @ [n_pos*C1, C2]; fold the bn2 scale into the weight columns.
    w2f = jnp.transpose(conv2_w, (2, 3, 1, 0)).reshape(n_pos * C1, C2) * s2[None, :]
    w2f = w2f.astype(jnp.bfloat16)
    b2_r = b2.reshape(1, C2).astype(jnp.float32)

    # ----------------------------- padding (review items) --------------------------
    d_in = C_in * H * W
    d_in_pad = _round_up(d_in, 128)             # 784 -> 896 (7x128): full MXU K passes
    d_mid = n_pos * C1                          # 512
    n_pad = max(128, _round_up(classes, 128))   # classes=10 -> 128: lane-dense stores

    # Zero-pad M's rows (zeros contribute nothing to the dot).
    M = jnp.pad(M, ((0, d_in_pad - d_in), (0, 0))).astype(jnp.bfloat16)

    # Classifier: transpose, zero-pad N; padded columns get zero bias and are sliced
    # off after the pallas_call, so the public output shape is unchanged.
    wc_t = jnp.pad(jnp.transpose(fc_w), ((0, 0), (0, n_pad - classes))).astype(jnp.bfloat16)
    bc_r = jnp.pad(fc_b, (0, n_pad - classes)).reshape(1, n_pad).astype(jnp.float32)

    # Pure reshape of the NCHW input (no HBM transpose): row b holds (c, u, v)
    # flattened, matching M's row ordering. Fed as bf16 (relu commutes with the cast)
    # and zero-padded on K; batch rows padded to a sublane/tile-aligned count.
    B_TILE = 256
    if B < B_TILE:
        B_TILE = max(8, _round_up(B, 8))
    B_pad = _round_up(B, B_TILE)
    x2d = x_nchw.reshape(B, d_in).astype(jnp.bfloat16)
    x2d = jnp.pad(x2d, ((0, B_pad - B), (0, d_in_pad - d_in)))

    n_steps = B_pad // B_TILE

    flops = 2 * B_pad * (d_in_pad * d_mid + d_mid * C2 + C2 * n_pad)
    bytes_accessed = (
        B_pad * d_in_pad * 2                       # x (bf16)
        + d_in_pad * d_mid * 2 + d_mid * C2 * 2 + C2 * n_pad * 2   # weights (bf16)
        + (d_mid + C2 + n_pad) * 4                 # biases (f32)
        + B_pad * n_pad * 4)                       # output (f32)

    # Weights ~1.7 MiB single-buffered (constant index_map) + x tile (<=256x896 bf16)
    # and output tile double-buffered: well inside even v7x's 32 MiB scoped VMEM
    # default, so no explicit vmem_limit_bytes is needed.
    out = pl.pallas_call(
        _aux_head_kernel,
        out_shape=jax.ShapeDtypeStruct((B_pad, n_pad), jnp.float32),
        grid=(n_steps,),
        in_specs=[
            pl.BlockSpec((B_TILE, d_in_pad), lambda i: (i, 0)),
            pl.BlockSpec((d_in_pad, d_mid), lambda i: (0, 0)),
            pl.BlockSpec((1, d_mid), lambda i: (0, 0)),
            pl.BlockSpec((d_mid, C2), lambda i: (0, 0)),
            pl.BlockSpec((1, C2), lambda i: (0, 0)),
            pl.BlockSpec((C2, n_pad), lambda i: (0, 0)),
            pl.BlockSpec((1, n_pad), lambda i: (0, 0)),
        ],
        out_specs=pl.BlockSpec((B_TILE, n_pad), lambda i: (i, 0)),
        compiler_params=pltpu.CompilerParams(
            dimension_semantics=("parallel",)),
        cost_estimate=pl.CostEstimate(
            flops=flops, transcendentals=0, bytes_accessed=bytes_accessed),
    )(x2d, M, b1_t, w2f, b2_r, wc_t, bc_r)

    return out[:B, :classes]


def _reference(x, conv1_w, g1, be1, m1, v1, conv2_w, g2, be2, m2, v2, fc_w, fc_b,
               *, eps=1e-5):
    """Pure-JAX f32 reference mirroring the PyTorch module (eval mode)."""
    h = jnp.maximum(x, 0.0)
    p = jax.lax.reduce_window(h, 0.0, jax.lax.add,
                              window_dimensions=(1, 1, 5, 5),
                              window_strides=(1, 1, 2, 2),
                              padding='VALID') / 25.0

    def conv_bn_relu(z, w, g, b, mu, var):
        y = jax.lax.conv_general_dilated(
            z, w, (1, 1), 'VALID', dimension_numbers=('NCHW', 'OIHW', 'NCHW'))
        s = g / jnp.sqrt(var + eps)
        bb = b - mu * s
        return jnp.maximum(y * s[None, :, None, None] + bb[None, :, None, None], 0.0)

    a1 = conv_bn_relu(p, conv1_w, g1, be1, m1, v1)
    a2 = conv_bn_relu(a1, conv2_w, g2, be2, m2, v2)
    flat = a2.reshape(a2.shape[0], -1)
    return flat @ fc_w.T + fc_b


if __name__ == "__main__":
    # AuxHeadImageNet(C_in=16, classes=10) on a [2, 16, 7, 7] input.
    B, C_IN, H, W = 2, 16, 7, 7
    CLASSES = 10
    C1, C2 = 128, 768

    key = jax.random.PRNGKey(0)
    ks = jax.random.split(key, 13)

    x = jax.random.normal(ks[0], (B, C_IN, H, W), dtype=jnp.float32)

    conv1_w = jax.random.normal(ks[1], (C1, C_IN, 1, 1), jnp.float32) / jnp.sqrt(C_IN)
    bn1_gamma = 1.0 + 0.1 * jax.random.normal(ks[2], (C1,), jnp.float32)
    bn1_beta = 0.1 * jax.random.normal(ks[3], (C1,), jnp.float32)
    bn1_mean = 0.1 * jax.random.normal(ks[4], (C1,), jnp.float32)
    bn1_var = jnp.abs(jax.random.normal(ks[5], (C1,), jnp.float32)) + 0.5

    conv2_w = jax.random.normal(ks[6], (C2, C1, 2, 2), jnp.float32) / jnp.sqrt(C1 * 4)
    bn2_gamma = 1.0 + 0.1 * jax.random.normal(ks[7], (C2,), jnp.float32)
    bn2_beta = 0.1 * jax.random.normal(ks[8], (C2,), jnp.float32)
    bn2_mean = 0.1 * jax.random.normal(ks[9], (C2,), jnp.float32)
    bn2_var = jnp.abs(jax.random.normal(ks[10], (C2,), jnp.float32)) + 0.5

    fc_w = jax.random.normal(ks[11], (CLASSES, C2), jnp.float32) / jnp.sqrt(C2)
    fc_b = 0.1 * jax.random.normal(ks[12], (CLASSES,), jnp.float32)

    fwd = jax.jit(aux_head_imagenet)
    out = fwd(x, conv1_w, bn1_gamma, bn1_beta, bn1_mean, bn1_var,
              conv2_w, bn2_gamma, bn2_beta, bn2_mean, bn2_var, fc_w, fc_b)
    out = jax.block_until_ready(out)

    ref = _reference(x, conv1_w, bn1_gamma, bn1_beta, bn1_mean, bn1_var,
                     conv2_w, bn2_gamma, bn2_beta, bn2_mean, bn2_var, fc_w, fc_b)

    assert out.shape == (B, CLASSES)
    # bf16 matmul operands / bf16 input stream (f32 accumulation) vs. a pure-f32
    # reference -> tolerance is wider than an all-f32 kernel would use.
    assert jnp.allclose(out, ref, atol=1e-2, rtol=1e-2), (
        f"mismatch vs reference: max abs diff {jnp.max(jnp.abs(out - ref))}")

    print("KERNEL_OK")
</pallas_src>

<mosaic_0001>
module attributes {stable_mosaic.version = 11 : i64} {
  func.func @_aux_head_kernel(%arg0: i32, %arg1: memref<8x896xbf16, #tpu.memory_space<vmem>>, %arg2: memref<896x512xbf16, #tpu.memory_space<vmem>>, %arg3: memref<1x512xf32, #tpu.memory_space<vmem>>, %arg4: memref<512x768xbf16, #tpu.memory_space<vmem>>, %arg5: memref<1x768xf32, #tpu.memory_space<vmem>>, %arg6: memref<768x128xbf16, #tpu.memory_space<vmem>>, %arg7: memref<1x128xf32, #tpu.memory_space<vmem>>, %arg8: memref<8x128xf32, #tpu.memory_space<vmem>>) attributes {dimension_semantics = [#tpu.dimension_semantics<parallel>], iteration_bounds = array<i64: 1>, scalar_prefetch = 0 : i64, scratch_operands = 0 : i64, tpu.core_type = #tpu.core_type<tc>, window_params = [{transform_indices = @transform_0, window_bounds = array<i64: 8, 896>}, {pipeline_mode = #tpu.pipeline_mode<synchronous>, transform_indices = @transform_1, window_bounds = array<i64: 896, 512>}, {pipeline_mode = #tpu.pipeline_mode<synchronous>, transform_indices = @transform_2, window_bounds = array<i64: 1, 512>}, {pipeline_mode = #tpu.pipeline_mode<synchronous>, transform_indices = @transform_3, window_bounds = array<i64: 512, 768>}, {pipeline_mode = #tpu.pipeline_mode<synchronous>, transform_indices = @transform_4, window_bounds = array<i64: 1, 768>}, {pipeline_mode = #tpu.pipeline_mode<synchronous>, transform_indices = @transform_5, window_bounds = array<i64: 768, 128>}, {pipeline_mode = #tpu.pipeline_mode<synchronous>, transform_indices = @transform_6, window_bounds = array<i64: 1, 128>}, {transform_indices = @transform_7, window_bounds = array<i64: 8, 128>}]} {
    %c0 = arith.constant 0 : index
    %c0_0 = arith.constant 0 : index
    %0 = vector.load %arg1[%c0, %c0_0] : memref<8x896xbf16, #tpu.memory_space<vmem>>, vector<8x896xbf16>
    %cst = arith.constant 0.000000e+00 : bf16
    %1 = vector.broadcast %cst : bf16 to vector<8x896xbf16>
    %2 = arith.maximumf %0, %1 : vector<8x896xbf16>
    %c0_1 = arith.constant 0 : index
    %c0_2 = arith.constant 0 : index
    %3 = vector.load %arg2[%c0_1, %c0_2] : memref<896x512xbf16, #tpu.memory_space<vmem>>, vector<896x512xbf16>
    %cst_3 = arith.constant dense<0.000000e+00> : vector<8x512xf32>
    %4 = tpu.matmul %2, %3, %cst_3 {dimension_numbers = #tpu.dot_dimension_numbers<[1], [0], [0], [1], [0, 0, 1, 1], [], []>} : vector<8x896xbf16>, vector<896x512xbf16>, vector<8x512xf32> -> vector<8x512xf32>
    %c0_4 = arith.constant 0 : index
    %c0_5 = arith.constant 0 : index
    %5 = vector.load %arg3[%c0_4, %c0_5] : memref<1x512xf32, #tpu.memory_space<vmem>>, vector<1x512xf32>
    %6 = vector.broadcast %5 : vector<1x512xf32> to vector<8x512xf32>
    %7 = arith.addf %4, %6 : vector<8x512xf32>
    %cst_6 = arith.constant 0.000000e+00 : f32
    %8 = vector.broadcast %cst_6 : f32 to vector<8x512xf32>
    %9 = arith.maximumf %7, %8 : vector<8x512xf32>
    %10 = arith.truncf %9 : vector<8x512xf32> to vector<8x512xbf16>
    %c0_7 = arith.constant 0 : index
    %c0_8 = arith.constant 0 : index
    %11 = vector.load %arg4[%c0_7, %c0_8] : memref<512x768xbf16, #tpu.memory_space<vmem>>, vector<512x768xbf16>
    %cst_9 = arith.constant dense<0.000000e+00> : vector<8x768xf32>
    %12 = tpu.matmul %10, %11, %cst_9 {dimension_numbers = #tpu.dot_dimension_numbers<[1], [0], [0], [1], [0, 0, 1, 1], [], []>} : vector<8x512xbf16>, vector<512x768xbf16>, vector<8x768xf32> -> vector<8x768xf32>
    %c0_10 = arith.constant 0 : index
    %c0_11 = arith.constant 0 : index
    %13 = vector.load %arg5[%c0_10, %c0_11] : memref<1x768xf32, #tpu.memory_space<vmem>>, vector<1x768xf32>
    %14 = vector.broadcast %13 : vector<1x768xf32> to vector<8x768xf32>
    %15 = arith.addf %12, %14 : vector<8x768xf32>
    %cst_12 = arith.constant 0.000000e+00 : f32
    %16 = vector.broadcast %cst_12 : f32 to vector<8x768xf32>
    %17 = arith.maximumf %15, %16 : vector<8x768xf32>
    %18 = arith.truncf %17 : vector<8x768xf32> to vector<8x768xbf16>
    %c0_13 = arith.constant 0 : index
    %c0_14 = arith.constant 0 : index
    %19 = vector.load %arg6[%c0_13, %c0_14] : memref<768x128xbf16, #tpu.memory_space<vmem>>, vector<768x128xbf16>
    %cst_15 = arith.constant dense<0.000000e+00> : vector<8x128xf32>
    %20 = tpu.matmul %18, %19, %cst_15 {dimension_numbers = #tpu.dot_dimension_numbers<[1], [0], [0], [1], [0, 0, 1, 1], [], []>} : vector<8x768xbf16>, vector<768x128xbf16>, vector<8x128xf32> -> vector<8x128xf32>
    %c0_16 = arith.constant 0 : index
    %c0_17 = arith.constant 0 : index
    %21 = vector.load %arg7[%c0_16, %c0_17] : memref<1x128xf32, #tpu.memory_space<vmem>>, vector<1x128xf32>
    %22 = vector.broadcast %21 : vector<1x128xf32> to vector<8x128xf32>
    %23 = arith.addf %20, %22 : vector<8x128xf32>
    %c0_18 = arith.constant 0 : index
    %c0_19 = arith.constant 0 : index
    %24 = vector.load %arg8[%c0_18, %c0_19] : memref<8x128xf32, #tpu.memory_space<vmem>>, vector<8x128xf32>
    tpu.vector_store %arg8[%c0_18, %c0_19], %23 {strides = array<i32>} : memref<8x128xf32, #tpu.memory_space<vmem>>, vector<8x128xf32>,
    return
  }
  func.func @transform_0(%arg0: i32) -> (i32, i32) {
    %c0_i32 = arith.constant 0 : i32
    %c0_i32_0 = arith.constant 0 : i32
    return %arg0, %c0_i32 : i32, i32
  }
  func.func @transform_1(%arg0: i32) -> (i32, i32) {
    %c0_i32 = arith.constant 0 : i32
    %c0_i32_0 = arith.constant 0 : i32
    %c0_i32_1 = arith.constant 0 : i32
    return %c0_i32, %c0_i32_0 : i32, i32
  }
  func.func @transform_2(%arg0: i32) -> (i32, i32) {
    %c0_i32 = arith.constant 0 : i32
    %c0_i32_0 = arith.constant 0 : i32
    %c0_i32_1 = arith.constant 0 : i32
    return %c0_i32, %c0_i32_0 : i32, i32
  }
  func.func @transform_3(%arg0: i32) -> (i32, i32) {
    %c0_i32 = arith.constant 0 : i32
    %c0_i32_0 = arith.constant 0 : i32
    %c0_i32_1 = arith.constant 0 : i32
    return %c0_i32, %c0_i32_0 : i32, i32
  }
  func.func @transform_4(%arg0: i32) -> (i32, i32) {
    %c0_i32 = arith.constant 0 : i32
    %c0_i32_0 = arith.constant 0 : i32
    %c0_i32_1 = arith.constant 0 : i32
    return %c0_i32, %c0_i32_0 : i32, i32
  }
  func.func @transform_5(%arg0: i32) -> (i32, i32) {
    %c0_i32 = arith.constant 0 : i32
    %c0_i32_0 = arith.constant 0 : i32
    %c0_i32_1 = arith.constant 0 : i32
    return %c0_i32, %c0_i32_0 : i32, i32
  }
  func.func @transform_6(%arg0: i32) -> (i32, i32) {
    %c0_i32 = arith.constant 0 : i32
    %c0_i32_0 = arith.constant 0 : i32
    %c0_i32_1 = arith.constant 0 : i32
    return %c0_i32, %c0_i32_0 : i32, i32
  }
  func.func @transform_7(%arg0: i32) -> (i32, i32) {
    %c0_i32 = arith.constant 0 : i32
    %c0_i32_0 = arith.constant 0 : i32
    return %arg0, %c0_i32 : i32, i32
  }
}

</mosaic_0001>

<bundles_post_ra>
// kernel: tile.8
= control target key start
LH: loop header
LB: loop body
LE: loop exit
PB: predicated region body
PF: predicated region fallthrough
CT: control target
= control target key end

     0   :  { %s22_s0 = inlined_call_operand.vmem [shape: f32[128], index: 0, kind: input, shape index: {}]   ;;  %s23_s1 = inlined_call_operand.vmem [shape: f32[4,128], index: 1, kind: output, shape index: {}]  }
   0x1   :  { %v4_v0 = vld [vmem:[%s22_s0] ss:$0 sm:$0xff] }
   0x2   :  { %5 = vst [vmem:[%s23_s1] sm:$0xf] %v4_v0 }

// kernel: aux_head_imagenet.1
= control target key start
LH: loop header
LB: loop body
LE: loop exit
PB: predicated region body
PF: predicated region fallthrough
CT: control target
= control target key end

     0   :  { %v4977_v48 = vmov 0   ;;  %s6513_s1 = inlined_call_operand.vmem [shape: bf16[896,512], index: 1, kind: input, shape index: {}]   ;;  %s6514_s0 = inlined_call_operand.vmem [shape: bf16[8,896], index: 0, kind: input, shape index: {}]   ;;  %s6515_s3 = inlined_call_operand.vmem [shape: bf16[512,768], index: 3, kind: input, shape index: {}]   ;;  %s6516_s2 = inlined_call_operand.vmem [shape: f32[1,512], index: 2, kind: input, shape index: {}]   ;;  %s6517_s5 = inlined_call_operand.vmem [shape: bf16[768,128], index: 5, kind: input, shape index: {}]   ;;  %s6518_s4 = inlined_call_operand.vmem [shape: f32[1,768], index: 4, kind: input, shape index: {}]   ;;  %s6519_s6 = inlined_call_operand.vmem [shape: f32[1,128], index: 6, kind: input, shape index: {}]   ;;  %s6520_s7 = inlined_call_operand.vmem [shape: f32[8,128], index: 7, kind: output, shape index: {}]  }
   0x1   :  { %v4305_v0 = vld [vmem:[%s6513_s1 + $0x4] ss:$16 sps:$4 sm:$0xff]   ;;  %v4307_v1 = vld [vmem:[%s6513_s1 + $0xc] ss:$16 sps:$4 sm:$0xff]   ;;  %v4309_v2 = vld [vmem:[%s6513_s1] ss:$16 sps:$4 sm:$0xff]  }
   0x2   :  { %1426 = vmatprep.subr.bf16.mxu0 %v4305_v0  ;;  %v4310_v3 = vld [vmem:[%s6513_s1 + $0x8] ss:$16 sps:$4 sm:$0xff]   ;;  %1590 = vmatprep.subr.bf16.mxu1 %v4307_v1  ;;  %v4311_v4 = vld [vmem:[%s6513_s1 + $0x24] ss:$16 sps:$4 sm:$0xff]   ;;  %v4313_v5 = vld [vmem:[%s6513_s1 + $0x2c] ss:$16 sps:$4 sm:$0xff]  }
   0x3   :  { %1427 = vmatpush1.bf16.msra.mxu0 %v4309_v2  ;;  %1591 = vmatpush1.bf16.msra.mxu1 %v4310_v3  ;;  %v4315_v6 = vld [vmem:[%s6513_s1 + $0x20] ss:$16 sps:$4 sm:$0xff]   ;;  %v4316_v7 = vld [vmem:[%s6513_s1 + $0x28] ss:$16 sps:$4 sm:$0xff]   ;;  %v4317_v8 = vld [vmem:[%s6513_s1 + $0x44] ss:$16 sps:$4 sm:$0xff]  }
   0x4   :  { %1428 = vmatprep.subr.bf16.mxu0 %v4311_v4  ;;  %1592 = vmatprep.subr.bf16.mxu1 %v4313_v5  ;;  %v4319_v9 = vld [vmem:[%s6513_s1 + $0x4c] ss:$16 sps:$4 sm:$0xff]   ;;  %v4321_v10 = vld [vmem:[%s6513_s1 + $0x40] ss:$16 sps:$4 sm:$0xff]   ;;  %v4322_v11 = vld [vmem:[%s6513_s1 + $0x48] ss:$16 sps:$4 sm:$0xff]  }
   0x5   :  { %v4323_v12 = vld [vmem:[%s6513_s1 + $0x64] ss:$16 sps:$4 sm:$0xff]   ;;  %v4325_v13 = vld [vmem:[%s6513_s1 + $0x6c] ss:$16 sps:$4 sm:$0xff]   ;;  %v4327_v14 = vld [vmem:[%s6513_s1 + $0x60] ss:$16 sps:$4 sm:$0xff]  }
   0x6   :  { %v4328_v15 = vld [vmem:[%s6513_s1 + $0x68] ss:$16 sps:$4 sm:$0xff]   ;;  %v4329_v16 = vld [vmem:[%s6513_s1 + $0x84] ss:$16 sps:$4 sm:$0xff]   ;;  %v4331_v17 = vld [vmem:[%s6513_s1 + $0x8c] ss:$16 sps:$4 sm:$0xff]  }
   0x7   :  { %1429 = vmatpush1.bf16.msra.mxu0 %v4315_v6  ;;  %1593 = vmatpush1.bf16.msra.mxu1 %v4316_v7  ;;  %v4333_v18 = vld [vmem:[%s6513_s1 + $0x80] ss:$16 sps:$4 sm:$0xff]   ;;  %v4334_v19 = vld [vmem:[%s6513_s1 + $0x88] ss:$16 sps:$4 sm:$0xff]   ;;  %v4335_v20 = vld [vmem:[%s6513_s1 + $0xa4] ss:$16 sps:$4 sm:$0xff]  }
   0x8   :  { %1430 = vmatprep.subr.bf16.mxu0 %v4317_v8  ;;  %1594 = vmatprep.subr.bf16.mxu1 %v4319_v9  ;;  %v4337_v21 = vld [vmem:[%s6513_s1 + $0xac] ss:$16 sps:$4 sm:$0xff]   ;;  %v4339_v22 = vld [vmem:[%s6513_s1 + $0xa0] ss:$16 sps:$4 sm:$0xff]   ;;  %v4340_v23 = vld [vmem:[%s6513_s1 + $0xa8] ss:$16 sps:$4 sm:$0xff]  }
   0x9   :  { %v4341_v24 = vld [vmem:[%s6513_s1 + $0xc4] ss:$16 sps:$4 sm:$0xff]   ;;  %v4343_v25 = vld [vmem:[%s6513_s1 + $0xcc] ss:$16 sps:$4 sm:$0xff]   ;;  %v4345_v26 = vld [vmem:[%s6513_s1 + $0xc0] ss:$16 sps:$4 sm:$0xff]  }
   0xa   :  { %v4346_v27 = vld [vmem:[%s6513_s1 + $0xc8] ss:$16 sps:$4 sm:$0xff]   ;;  %v4347_v28 = vld [vmem:[%s6513_s1 + $0xe4] ss:$16 sps:$4 sm:$0xff]   ;;  %v4349_v29 = vld [vmem:[%s6513_s1 + $0xec] ss:$16 sps:$4 sm:$0xff]  }
   0xb   :  { %1431 = vmatpush1.bf16.msra.mxu0 %v4321_v10  ;;  %1595 = vmatpush1.bf16.msra.mxu1 %v4322_v11  ;;  %v4351_v30 = vld [vmem:[%s6513_s1 + $0xe0] ss:$16 sps:$4 sm:$0xff]   ;;  %v4352_v31 = vld [vmem:[%s6513_s1 + $0xe8] ss:$16 sps:$4 sm:$0xff]   ;;  %v4353_v32 = vld [vmem:[%s6513_s1 + $0x104] ss:$16 sps:$4 sm:$0xff]  }
   0xc   :  { %1432 = vmatprep.subr.bf16.mxu0 %v4323_v12  ;;  %1596 = vmatprep.subr.bf16.mxu1 %v4325_v13  ;;  %v4355_v33 = vld [vmem:[%s6513_s1 + $0x10c] ss:$16 sps:$4 sm:$0xff]   ;;  %v4357_v34 = vld [vmem:[%s6513_s1 + $0x100] ss:$16 sps:$4 sm:$0xff]   ;;  %v4358_v35 = vld [vmem:[%s6513_s1 + $0x108] ss:$16 sps:$4 sm:$0xff]  }
   0xd   :  { %v4359_v36 = vld [vmem:[%s6513_s1 + $0x124] ss:$16 sps:$4 sm:$0xff]   ;;  %v4361_v37 = vld [vmem:[%s6513_s1 + $0x12c] ss:$16 sps:$4 sm:$0xff]   ;;  %v4363_v38 = vld [vmem:[%s6513_s1 + $0x120] ss:$16 sps:$4 sm:$0xff]  }
   0xe   :  { %v4364_v39 = vld [vmem:[%s6513_s1 + $0x128] ss:$16 sps:$4 sm:$0xff]   ;;  %v4365_v40 = vld [vmem:[%s6513_s1 + $0x144] ss:$16 sps:$4 sm:$0xff]   ;;  %v4367_v41 = vld [vmem:[%s6513_s1 + $0x14c] ss:$16 sps:$4 sm:$0xff]  }
   0xf   :  { %1433 = vmatpush1.bf16.msra.mxu0 %v4327_v14  ;;  %1597 = vmatpush1.bf16.msra.mxu1 %v4328_v15  ;;  %v4369_v42 = vld [vmem:[%s6513_s1 + $0x140] ss:$16 sps:$4 sm:$0xff]   ;;  %v4370_v43 = vld [vmem:[%s6513_s1 + $0x148] ss:$16 sps:$4 sm:$0xff]   ;;  %v4371_v44 = vld [vmem:[%s6513_s1 + $0x164] ss:$16 sps:$4 sm:$0xff]  }
  0x10   :  { %1434 = vmatprep.subr.bf16.mxu0 %v4329_v16  ;;  %1598 = vmatprep.subr.bf16.mxu1 %v4331_v17  ;;  %v4373_v45 = vld [vmem:[%s6513_s1 + $0x16c] ss:$16 sps:$4 sm:$0xff]   ;;  %v27_v46 = vld [vmem:[%s6514_s0] sm:$0xff]  ;;  %v4376_v50 = vld [vmem:[%s6513_s1 + $0x168] ss:$16 sps:$4 sm:$0xff]  }
  0x11   :  { %v4375_v47 = vld [vmem:[%s6513_s1 + $0x160] ss:$16 sps:$4 sm:$0xff]   ;;  %v31_v49 = vmax.bf16 %v4977_v48, %v27_v46  ;;  %v4377_v51 = vld [vmem:[%s6513_s1 + $0x184] ss:$16 sps:$4 sm:$0xff]   ;;  %v4379_v52 = vld [vmem:[%s6513_s1 + $0x18c] ss:$16 sps:$4 sm:$0xff]  }
  0x12   :  { %v4381_v54 = vld [vmem:[%s6513_s1 + $0x180] ss:$16 sps:$4 sm:$0xff]   ;;  %v4382_v55 = vld [vmem:[%s6513_s1 + $0x188] ss:$16 sps:$4 sm:$0xff]   ;;  %v4383_v56 = vld [vmem:[%s6513_s1 + $0x1a4] ss:$16 sps:$4 sm:$0xff]  }
  0x13   :  { %1435 = vmatpush1.bf16.msra.mxu0 %v4333_v18  ;;  %1599 = vmatpush1.bf16.msra.mxu1 %v4334_v19  ;;  %v3721_v53 = vcombine.high %v31_v49, %v31_v49  ;;  %v4385_v57 = vld [vmem:[%s6513_s1 + $0x1ac] ss:$16 sps:$4 sm:$0xff]   ;;  %v4387_v58 = vld [vmem:[%s6513_s1 + $0x1a0] ss:$16 sps:$4 sm:$0xff]   ;;  %v4388_v59 = vld [vmem:[%s6513_s1 + $0x1a8] ss:$16 sps:$4 sm:$0xff]   ;;  %v3720_v7 = vcombine.low %v31_v49, %v31_v49 }
  0x14   :  { %1436 = vmatprep.subr.bf16.mxu0 %v4335_v20  ;;  %1600 = vmatprep.subr.bf16.mxu1 %v4337_v21  ;;  %v4389_v60 = vld [vmem:[%s6513_s1 + $0x1c4] ss:$16 sps:$4 sm:$0xff]   ;;  %v4391_v61 = vld [vmem:[%s6513_s1 + $0x1cc] ss:$16 sps:$4 sm:$0xff]   ;;  %v4393_v62 = vld [vmem:[%s6513_s1 + $0x1c0] ss:$16 sps:$4 sm:$0xff]  }
  0x15   :  { %1458 = vmatprep.mubr.bf16.mxu0 %v3721_v53  ;;  %1622 = vmatprep.mubr.bf16.mxu1 %v3721_v53  ;;  %v4394_v63 = vld [vmem:[%s6513_s1 + $0x1c8] ss:$16 sps:$4 sm:$0xff]   ;;  %v4395_v0 = vld [vmem:[%s6513_s1 + $0x1e4] ss:$16 sps:$4 sm:$0xff]   ;;  %v4397_v1 = vld [vmem:[%s6513_s1 + $0x1ec] ss:$16 sps:$4 sm:$0xff]  }
  0x16   :  { %v4399_v2 = vld [vmem:[%s6513_s1 + $0x1e0] ss:$16 sps:$4 sm:$0xff]   ;;  %v4400_v3 = vld [vmem:[%s6513_s1 + $0x1e8] ss:$16 sps:$4 sm:$0xff]   ;;  %v4403_v4 = vld [vmem:[%s6513_s1 + $0x204] ss:$16 sps:$4 sm:$0xff]  }
  0x17   :  { %1437 = vmatpush1.bf16.msra.mxu0 %v4339_v22  ;;  %1601 = vmatpush1.bf16.msra.mxu1 %v4340_v23  ;;  %v4406_v5 = vld [vmem:[%s6513_s1 + $0x20c] ss:$16 sps:$4 sm:$0xff]   ;;  %v4401_v6 = vld [vmem:[%s6513_s1 + $0x200] ss:$16 sps:$4 sm:$0xff]   ;;  %v4404_v8 = vld [vmem:[%s6513_s1 + $0x208] ss:$16 sps:$4 sm:$0xff]  }
  0x18   :  { %1438 = vmatprep.subr.bf16.mxu0 %v4341_v24  ;;  %1602 = vmatprep.subr.bf16.mxu1 %v4343_v25  ;;  %v4409_v9 = vld [vmem:[%s6513_s1 + $0x224] ss:$16 sps:$4 sm:$0xff]   ;;  %v4412_v10 = vld [vmem:[%s6513_s1 + $0x22c] ss:$16 sps:$4 sm:$0xff]   ;;  %v4407_v11 = vld [vmem:[%s6513_s1 + $0x220] ss:$16 sps:$4 sm:$0xff]  }
  0x19   :  { %v4410_v12 = vld [vmem:[%s6513_s1 + $0x228] ss:$16 sps:$4 sm:$0xff]   ;;  %v4415_v13 = vld [vmem:[%s6513_s1 + $0x244] ss:$16 sps:$4 sm:$0xff]   ;;  %v4418_v14 = vld [vmem:[%s6513_s1 + $0x24c] ss:$16 sps:$4 sm:$0xff]  }
  0x1a   :  { %v4413_v15 = vld [vmem:[%s6513_s1 + $0x240] ss:$16 sps:$4 sm:$0xff]   ;;  %v4416_v16 = vld [vmem:[%s6513_s1 + $0x248] ss:$16 sps:$4 sm:$0xff]   ;;  %v4421_v17 = vld [vmem:[%s6513_s1 + $0x264] ss:$16 sps:$4 sm:$0xff]  }
  0x1b   :  { %1439 = vmatpush1.bf16.msra.mxu0 %v4345_v26  ;;  %1603 = vmatpush1.bf16.msra.mxu1 %v4346_v27  ;;  %v4424_v18 = vld [vmem:[%s6513_s1 + $0x26c] ss:$16 sps:$4 sm:$0xff]   ;;  %v4419_v19 = vld [vmem:[%s6513_s1 + $0x260] ss:$16 sps:$4 sm:$0xff]   ;;  %v4422_v20 = vld [vmem:[%s6513_s1 + $0x268] ss:$16 sps:$4 sm:$0xff]  }
  0x1c   :  { %1440 = vmatprep.subr.bf16.mxu0 %v4347_v28  ;;  %1604 = vmatprep.subr.bf16.mxu1 %v4349_v29  ;;  %v4427_v21 = vld [vmem:[%s6513_s1 + $0x284] ss:$16 sps:$4 sm:$0xff]   ;;  %v4430_v22 = vld [vmem:[%s6513_s1 + $0x28c] ss:$16 sps:$4 sm:$0xff]   ;;  %v4425_v23 = vld [vmem:[%s6513_s1 + $0x280] ss:$16 sps:$4 sm:$0xff]  }
  0x1d   :  { %v4428_v24 = vld [vmem:[%s6513_s1 + $0x288] ss:$16 sps:$4 sm:$0xff]   ;;  %v4433_v25 = vld [vmem:[%s6513_s1 + $0x2a4] ss:$16 sps:$4 sm:$0xff]   ;;  %v4436_v26 = vld [vmem:[%s6513_s1 + $0x2ac] ss:$16 sps:$4 sm:$0xff]  }
  0x1e   :  { %v4431_v27 = vld [vmem:[%s6513_s1 + $0x2a0] ss:$16 sps:$4 sm:$0xff]   ;;  %v4434_v28 = vld [vmem:[%s6513_s1 + $0x2a8] ss:$16 sps:$4 sm:$0xff]   ;;  %v4439_v29 = vld [vmem:[%s6513_s1 + $0x2c4] ss:$16 sps:$4 sm:$0xff]  }
  0x1f   :  { %1441 = vmatpush1.bf16.msra.mxu0 %v4351_v30  ;;  %1605 = vmatpush1.bf16.msra.mxu1 %v4352_v31  ;;  %v4442_v30 = vld [vmem:[%s6513_s1 + $0x2cc] ss:$16 sps:$4 sm:$0xff]   ;;  %v4455_v46 = vld [vmem:[%s6513_s1 + $0x320] ss:$16 sps:$4 sm:$0xff]   ;;  %v4463_v49 = vld [vmem:[%s6513_s1 + $0x344] ss:$16 sps:$4 sm:$0xff]  }
  0x20   :  { %1442 = vmatprep.subr.bf16.mxu0 %v4353_v32  ;;  %1606 = vmatprep.subr.bf16.mxu1 %v4355_v33  ;;  %v28_v31 = vld [vmem:[%s6514_s0 + $0x8] sm:$0xff]  ;;  %v4437_v33 = vld [vmem:[%s6513_s1 + $0x2c0] ss:$16 sps:$4 sm:$0xff]   ;;  %v4469_v53 = vld [vmem:[%s6513_s1 + $0x364] ss:$16 sps:$4 sm:$0xff]  }
  0x21   :  { %v5296_v32 = vmax.bf16 %v4977_v48, %v28_v31  ;;  %v4521_v31 = vld [vmem:[%s6513_s1 + $0x480] ss:$16 sps:$4 sm:$0xff]  }
  0x23   :  { %1443 = vmatpush1.bf16.msra.mxu0 %v4357_v34  ;;  %1607 = vmatpush1.bf16.msra.mxu1 %v4358_v35  ;;  %v4440_v34 = vld [vmem:[%s6513_s1 + $0x2c8] ss:$16 sps:$4 sm:$0xff]   ;;  %v3723_v35 = vcombine.high %v5296_v32, %v5296_v32 }
  0x24   :  { %1444 = vmatprep.subr.bf16.mxu0 %v4359_v36  ;;  %1608 = vmatprep.subr.bf16.mxu1 %v4361_v37  ;;  %v4445_v36 = vld [vmem:[%s6513_s1 + $0x2e4] ss:$16 sps:$4 sm:$0xff]   ;;  %v4448_v37 = vld [vmem:[%s6513_s1 + $0x2ec] ss:$16 sps:$4 sm:$0xff]  }
  0x27   :  { %1445 = vmatpush1.bf16.msra.mxu0 %v4363_v38  ;;  %1609 = vmatpush1.bf16.msra.mxu1 %v4364_v39  ;;  %v4443_v38 = vld [vmem:[%s6513_s1 + $0x2e0] ss:$16 sps:$4 sm:$0xff]   ;;  %v4446_v39 = vld [vmem:[%s6513_s1 + $0x2e8] ss:$16 sps:$4 sm:$0xff]  }
  0x28   :  { %1446 = vmatprep.subr.bf16.mxu0 %v4365_v40  ;;  %1610 = vmatprep.subr.bf16.mxu1 %v4367_v41  ;;  %v4451_v40 = vld [vmem:[%s6513_s1 + $0x304] ss:$16 sps:$4 sm:$0xff]   ;;  %v4454_v41 = vld [vmem:[%s6513_s1 + $0x30c] ss:$16 sps:$4 sm:$0xff]  }
  0x2b   :  { %1447 = vmatpush1.bf16.msra.mxu0 %v4369_v42  ;;  %1611 = vmatpush1.bf16.msra.mxu1 %v4370_v43  ;;  %v4449_v42 = vld [vmem:[%s6513_s1 + $0x300] ss:$16 sps:$4 sm:$0xff]   ;;  %v4452_v43 = vld [vmem:[%s6513_s1 + $0x308] ss:$16 sps:$4 sm:$0xff]  }
  0x2c   :  { %1448 = vmatprep.subr.bf16.mxu0 %v4371_v44  ;;  %1612 = vmatprep.subr.bf16.mxu1 %v4373_v45  ;;  %v4457_v44 = vld [vmem:[%s6513_s1 + $0x324] ss:$16 sps:$4 sm:$0xff]   ;;  %v4460_v45 = vld [vmem:[%s6513_s1 + $0x32c] ss:$16 sps:$4 sm:$0xff]  }
  0x2f   :  { %1449 = vmatpush1.bf16.msra.mxu0 %v4375_v47  ;;  %1613 = vmatpush1.bf16.msra.mxu1 %v4376_v50  ;;  %v4458_v47 = vld [vmem:[%s6513_s1 + $0x328] ss:$16 sps:$4 sm:$0xff]   ;;  %v4466_v50 = vld [vmem:[%s6513_s1 + $0x34c] ss:$16 sps:$4 sm:$0xff]  }
  0x30   :  { %1450 = vmatprep.subr.bf16.mxu0 %v4377_v51  ;;  %1614 = vmatprep.subr.bf16.mxu1 %v4379_v52  ;;  %v4461_v51 = vld [vmem:[%s6513_s1 + $0x340] ss:$16 sps:$4 sm:$0xff]   ;;  %v4464_v52 = vld [vmem:[%s6513_s1 + $0x348] ss:$16 sps:$4 sm:$0xff]  }
  0x33   :  { %1451 = vmatpush1.bf16.msra.mxu0 %v4381_v54  ;;  %1615 = vmatpush1.bf16.msra.mxu1 %v4382_v55  ;;  %v4472_v54 = vld [vmem:[%s6513_s1 + $0x36c] ss:$16 sps:$4 sm:$0xff]   ;;  %v4467_v55 = vld [vmem:[%s6513_s1 + $0x360] ss:$16 sps:$4 sm:$0xff]  }
  0x34   :  { %1452 = vmatprep.subr.bf16.mxu0 %v4383_v56  ;;  %1616 = vmatprep.subr.bf16.mxu1 %v4385_v57  ;;  %v4470_v56 = vld [vmem:[%s6513_s1 + $0x368] ss:$16 sps:$4 sm:$0xff]   ;;  %v4475_v57 = vld [vmem:[%s6513_s1 + $0x384] ss:$16 sps:$4 sm:$0xff]  }
  0x37   :  { %1453 = vmatpush1.bf16.msra.mxu0 %v4387_v58  ;;  %1617 = vmatpush1.bf16.msra.mxu1 %v4388_v59  ;;  %v4478_v58 = vld [vmem:[%s6513_s1 + $0x38c] ss:$16 sps:$4 sm:$0xff]   ;;  %v4473_v59 = vld [vmem:[%s6513_s1 + $0x380] ss:$16 sps:$4 sm:$0xff]  }
  0x38   :  { %1454 = vmatprep.subr.bf16.mxu0 %v4389_v60  ;;  %1618 = vmatprep.subr.bf16.mxu1 %v4391_v61  ;;  %v4476_v60 = vld [vmem:[%s6513_s1 + $0x388] ss:$16 sps:$4 sm:$0xff]   ;;  %v4481_v61 = vld [vmem:[%s6513_s1 + $0x3a4] ss:$16 sps:$4 sm:$0xff]  }
  0x3b   :  { %1455 = vmatpush1.bf16.msra.mxu0 %v4393_v62  ;;  %1619 = vmatpush1.bf16.msra.mxu1 %v4394_v63  ;;  %v4484_v62 = vld [vmem:[%s6513_s1 + $0x3ac] ss:$16 sps:$4 sm:$0xff]   ;;  %v4479_v63 = vld [vmem:[%s6513_s1 + $0x3a0] ss:$16 sps:$4 sm:$0xff]  }
  0x3c   :  { %1456 = vmatprep.subr.bf16.mxu0 %v4395_v0  ;;  %1620 = vmatprep.subr.bf16.mxu1 %v4397_v1  ;;  %v4482_v0 = vld [vmem:[%s6513_s1 + $0x3a8] ss:$16 sps:$4 sm:$0xff]   ;;  %v4487_v1 = vld [vmem:[%s6513_s1 + $0x3c4] ss:$16 sps:$4 sm:$0xff]  }
  0x3f   :  { %1457 = vmatpush1.bf16.msra.mxu0 %v4399_v2  ;;  %1621 = vmatpush1.bf16.msra.mxu1 %v4400_v3  ;;  %v4490_v2 = vld [vmem:[%s6513_s1 + $0x3cc] ss:$16 sps:$4 sm:$0xff]   ;;  %v4485_v3 = vld [vmem:[%s6513_s1 + $0x3c0] ss:$16 sps:$4 sm:$0xff]  }
  0x40   :  { %1467 = vmatprep.subr.bf16.mxu0 %v4403_v4  ;;  %1631 = vmatprep.subr.bf16.mxu1 %v4406_v5  ;;  %v4488_v4 = vld [vmem:[%s6513_s1 + $0x3c8] ss:$16 sps:$4 sm:$0xff]   ;;  %v4493_v5 = vld [vmem:[%s6513_s1 + $0x3e4] ss:$16 sps:$4 sm:$0xff]  }
  0x42   :  { %1459 = vmatmul.mubr.bf16.vlgmr.msra.gmra.mrb[0].mxu0 %v3720_v7  ;;  %1623 = vmatmul.mubr.bf16.vlgmr.msra.gmra.mrb[0].mxu1 %v3720_v7  ;;  %v4491_v7 = vld [vmem:[%s6513_s1 + $0x3e0] ss:$16 sps:$4 sm:$0xff]  }
  0x43   :  { %1468 = vmatpush1.bf16.msra.mxu0 %v4401_v6  ;;  %1632 = vmatpush1.bf16.msra.mxu1 %v4404_v8  ;;  %v4496_v6 = vld [vmem:[%s6513_s1 + $0x3ec] ss:$16 sps:$4 sm:$0xff]   ;;  %v4494_v8 = vld [vmem:[%s6513_s1 + $0x3e8] ss:$16 sps:$4 sm:$0xff]  }
  0x44   :  { %1469 = vmatprep.subr.bf16.mxu0 %v4409_v9  ;;  %1633 = vmatprep.subr.bf16.mxu1 %v4412_v10  ;;  %v4499_v9 = vld [vmem:[%s6513_s1 + $0x404] ss:$16 sps:$4 sm:$0xff]   ;;  %v4502_v10 = vld [vmem:[%s6513_s1 + $0x40c] ss:$16 sps:$4 sm:$0xff]  }
  0x45   :  { %1499 = vmatprep.mubr.bf16.mxu0 %v3723_v35  ;;  %1663 = vmatprep.mubr.bf16.mxu1 %v3723_v35  ;;  %v4527_v35 = vld [vmem:[%s6513_s1 + $0x4a0] ss:$16 sps:$4 sm:$0xff]  }
  0x47   :  { %1470 = vmatpush1.bf16.msra.mxu0 %v4407_v11  ;;  %1634 = vmatpush1.bf16.msra.mxu1 %v4410_v12  ;;  %v4497_v11 = vld [vmem:[%s6513_s1 + $0x400] ss:$16 sps:$4 sm:$0xff]   ;;  %v3722_v12 = vcombine.low %v5296_v32, %v5296_v32  ;;  %v4524_v32 = vld [vmem:[%s6513_s1 + $0x488] ss:$16 sps:$4 sm:$0xff]  }
  0x48   :  { %1471 = vmatprep.subr.bf16.mxu0 %v4415_v13  ;;  %1635 = vmatprep.subr.bf16.mxu1 %v4418_v14  ;;  %v4500_v13 = vld [vmem:[%s6513_s1 + $0x408] ss:$16 sps:$4 sm:$0xff]   ;;  %v4505_v14 = vld [vmem:[%s6513_s1 + $0x424] ss:$16 sps:$4 sm:$0xff]  }
  0x4b   :  { %1472 = vmatpush1.bf16.msra.mxu0 %v4413_v15  ;;  %1636 = vmatpush1.bf16.msra.mxu1 %v4416_v16  ;;  %v29_v15 = vld [vmem:[%s6514_s0 + $0x10] sm:$0xff]  ;;  %v4508_v16 = vld [vmem:[%s6513_s1 + $0x42c] ss:$16 sps:$4 sm:$0xff]  }
  0x4c   :  { %1473 = vmatprep.subr.bf16.mxu0 %v4421_v17  ;;  %1637 = vmatprep.subr.bf16.mxu1 %v4424_v18  ;;  %v5438_v17 = vmax.bf16 %v4977_v48, %v29_v15  ;;  %v4503_v18 = vld [vmem:[%s6513_s1 + $0x420] ss:$16 sps:$4 sm:$0xff]   ;;  %v4598_v15 = vld [vmem:[%s6513_s1 + $0x60c] ss:$16 sps:$4 sm:$0xff]  }
  0x4f   :  { %1474 = vmatpush1.bf16.msra.mxu0 %v4419_v19  ;;  %1638 = vmatpush1.bf16.msra.mxu1 %v4422_v20  ;;  %v3725_v19 = vcombine.high %v5438_v17, %v5438_v17  ;;  %v4506_v20 = vld [vmem:[%s6513_s1 + $0x428] ss:$16 sps:$4 sm:$0xff]  }
  0x50   :  { %1475 = vmatprep.subr.bf16.mxu0 %v4427_v21  ;;  %1639 = vmatprep.subr.bf16.mxu1 %v4430_v22  ;;  %v4511_v21 = vld [vmem:[%s6513_s1 + $0x444] ss:$16 sps:$4 sm:$0xff]   ;;  %v4514_v22 = vld [vmem:[%s6513_s1 + $0x44c] ss:$16 sps:$4 sm:$0xff]  }
  0x53   :  { %1476 = vmatpush1.bf16.msra.mxu0 %v4425_v23  ;;  %1640 = vmatpush1.bf16.msra.mxu1 %v4428_v24  ;;  %v4509_v23 = vld [vmem:[%s6513_s1 + $0x440] ss:$16 sps:$4 sm:$0xff]   ;;  %v4512_v24 = vld [vmem:[%s6513_s1 + $0x448] ss:$16 sps:$4 sm:$0xff]  }
  0x54   :  { %1477 = vmatprep.subr.bf16.mxu0 %v4433_v25  ;;  %1641 = vmatprep.subr.bf16.mxu1 %v4436_v26  ;;  %v4517_v25 = vld [vmem:[%s6513_s1 + $0x464] ss:$16 sps:$4 sm:$0xff]   ;;  %v4520_v26 = vld [vmem:[%s6513_s1 + $0x46c] ss:$16 sps:$4 sm:$0xff]  }
  0x57   :  { %1478 = vmatpush1.bf16.msra.mxu0 %v4431_v27  ;;  %1642 = vmatpush1.bf16.msra.mxu1 %v4434_v28  ;;  %v4515_v27 = vld [vmem:[%s6513_s1 + $0x460] ss:$16 sps:$4 sm:$0xff]   ;;  %v4518_v28 = vld [vmem:[%s6513_s1 + $0x468] ss:$16 sps:$4 sm:$0xff]  }
  0x58   :  { %1479 = vmatprep.subr.bf16.mxu0 %v4439_v29  ;;  %1643 = vmatprep.subr.bf16.mxu1 %v4442_v30  ;;  %v4523_v29 = vld [vmem:[%s6513_s1 + $0x484] ss:$16 sps:$4 sm:$0xff]   ;;  %v4526_v30 = vld [vmem:[%s6513_s1 + $0x48c] ss:$16 sps:$4 sm:$0xff]  }
  0x5b   :  { %1480 = vmatpush1.bf16.msra.mxu0 %v4437_v33  ;;  %1644 = vmatpush1.bf16.msra.mxu1 %v4440_v34  ;;  %v4529_v33 = vld [vmem:[%s6513_s1 + $0x4a4] ss:$16 sps:$4 sm:$0xff]   ;;  %v4532_v34 = vld [vmem:[%s6513_s1 + $0x4ac] ss:$16 sps:$4 sm:$0xff]  }
  0x5c   :  { %1481 = vmatprep.subr.bf16.mxu0 %v4445_v36  ;;  %1645 = vmatprep.subr.bf16.mxu1 %v4448_v37  ;;  %v4530_v36 = vld [vmem:[%s6513_s1 + $0x4a8] ss:$16 sps:$4 sm:$0xff]   ;;  %v4535_v37 = vld [vmem:[%s6513_s1 + $0x4c4] ss:$16 sps:$4 sm:$0xff]  }
  0x5f   :  { %1482 = vmatpush1.bf16.msra.mxu0 %v4443_v38  ;;  %1646 = vmatpush1.bf16.msra.mxu1 %v4446_v39  ;;  %v4538_v38 = vld [vmem:[%s6513_s1 + $0x4cc] ss:$16 sps:$4 sm:$0xff]   ;;  %v4533_v39 = vld [vmem:[%s6513_s1 + $0x4c0] ss:$16 sps:$4 sm:$0xff]  }
  0x60   :  { %1483 = vmatprep.subr.bf16.mxu0 %v4451_v40  ;;  %1647 = vmatprep.subr.bf16.mxu1 %v4454_v41  ;;  %v4536_v40 = vld [vmem:[%s6513_s1 + $0x4c8] ss:$16 sps:$4 sm:$0xff]   ;;  %v4541_v41 = vld [vmem:[%s6513_s1 + $0x4e4] ss:$16 sps:$4 sm:$0xff]  }
  0x63   :  { %1484 = vmatpush1.bf16.msra.mxu0 %v4449_v42  ;;  %1648 = vmatpush1.bf16.msra.mxu1 %v4452_v43  ;;  %v4544_v42 = vld [vmem:[%s6513_s1 + $0x4ec] ss:$16 sps:$4 sm:$0xff]   ;;  %v4539_v43 = vld [vmem:[%s6513_s1 + $0x4e0] ss:$16 sps:$4 sm:$0xff]  }
  0x64   :  { %1485 = vmatprep.subr.bf16.mxu0 %v4457_v44  ;;  %1649 = vmatprep.subr.bf16.mxu1 %v4460_v45  ;;  %v4542_v44 = vld [vmem:[%s6513_s1 + $0x4e8] ss:$16 sps:$4 sm:$0xff]   ;;  %v4547_v45 = vld [vmem:[%s6513_s1 + $0x504] ss:$16 sps:$4 sm:$0xff]  }
  0x67   :  { %1486 = vmatpush1.bf16.msra.mxu0 %v4455_v46  ;;  %1650 = vmatpush1.bf16.msra.mxu1 %v4458_v47  ;;  %v4550_v46 = vld [vmem:[%s6513_s1 + $0x50c] ss:$16 sps:$4 sm:$0xff]   ;;  %v4545_v47 = vld [vmem:[%s6513_s1 + $0x500] ss:$16 sps:$4 sm:$0xff]  }
  0x68   :  { %1487 = vmatprep.subr.bf16.mxu0 %v4463_v49  ;;  %1651 = vmatprep.subr.bf16.mxu1 %v4466_v50  ;;  %v4548_v49 = vld [vmem:[%s6513_s1 + $0x508] ss:$16 sps:$4 sm:$0xff]   ;;  %v4553_v50 = vld [vmem:[%s6513_s1 + $0x524] ss:$16 sps:$4 sm:$0xff]  }
  0x6b   :  { %1488 = vmatpush1.bf16.msra.mxu0 %v4461_v51  ;;  %1652 = vmatpush1.bf16.msra.mxu1 %v4464_v52  ;;  %v4556_v51 = vld [vmem:[%s6513_s1 + $0x52c] ss:$16 sps:$4 sm:$0xff]   ;;  %v4551_v52 = vld [vmem:[%s6513_s1 + $0x520] ss:$16 sps:$4 sm:$0xff]  }
  0x6c   :  { %1489 = vmatprep.subr.bf16.mxu0 %v4469_v53  ;;  %1653 = vmatprep.subr.bf16.mxu1 %v4472_v54  ;;  %v4554_v53 = vld [vmem:[%s6513_s1 + $0x528] ss:$16 sps:$4 sm:$0xff]   ;;  %v4559_v54 = vld [vmem:[%s6513_s1 + $0x544] ss:$16 sps:$4 sm:$0xff]  }
  0x6f   :  { %1490 = vmatpush1.bf16.msra.mxu0 %v4467_v55  ;;  %1654 = vmatpush1.bf16.msra.mxu1 %v4470_v56  ;;  %v4562_v55 = vld [vmem:[%s6513_s1 + $0x54c] ss:$16 sps:$4 sm:$0xff]   ;;  %v4557_v56 = vld [vmem:[%s6513_s1 + $0x540] ss:$16 sps:$4 sm:$0xff]  }
  0x70   :  { %1491 = vmatprep.subr.bf16.mxu0 %v4475_v57  ;;  %1655 = vmatprep.subr.bf16.mxu1 %v4478_v58  ;;  %v4560_v57 = vld [vmem:[%s6513_s1 + $0x548] ss:$16 sps:$4 sm:$0xff]   ;;  %v4565_v58 = vld [vmem:[%s6513_s1 + $0x564] ss:$16 sps:$4 sm:$0xff]  }
  0x73   :  { %1492 = vmatpush1.bf16.msra.mxu0 %v4473_v59  ;;  %1656 = vmatpush1.bf16.msra.mxu1 %v4476_v60  ;;  %v4568_v59 = vld [vmem:[%s6513_s1 + $0x56c] ss:$16 sps:$4 sm:$0xff]   ;;  %v4563_v60 = vld [vmem:[%s6513_s1 + $0x560] ss:$16 sps:$4 sm:$0xff]  }
  0x74   :  { %1493 = vmatprep.subr.bf16.mxu0 %v4481_v61  ;;  %1657 = vmatprep.subr.bf16.mxu1 %v4484_v62  ;;  %v4566_v61 = vld [vmem:[%s6513_s1 + $0x568] ss:$16 sps:$4 sm:$0xff]   ;;  %v4571_v62 = vld [vmem:[%s6513_s1 + $0x584] ss:$16 sps:$4 sm:$0xff]  }
  0x77   :  { %1494 = vmatpush1.bf16.msra.mxu0 %v4479_v63  ;;  %1658 = vmatpush1.bf16.msra.mxu1 %v4482_v0  ;;  %v4574_v63 = vld [vmem:[%s6513_s1 + $0x58c] ss:$16 sps:$4 sm:$0xff]   ;;  %v4569_v0 = vld [vmem:[%s6513_s1 + $0x580] ss:$16 sps:$4 sm:$0xff]  }
  0x78   :  { %1495 = vmatprep.subr.bf16.mxu0 %v4487_v1  ;;  %1659 = vmatprep.subr.bf16.mxu1 %v4490_v2  ;;  %v4572_v1 = vld [vmem:[%s6513_s1 + $0x588] ss:$16 sps:$4 sm:$0xff]   ;;  %v4577_v2 = vld [vmem:[%s6513_s1 + $0x5a4] ss:$16 sps:$4 sm:$0xff]  }
  0x7b   :  { %1496 = vmatpush1.bf16.msra.mxu0 %v4485_v3  ;;  %1660 = vmatpush1.bf16.msra.mxu1 %v4488_v4  ;;  %v4580_v3 = vld [vmem:[%s6513_s1 + $0x5ac] ss:$16 sps:$4 sm:$0xff]   ;;  %v4575_v4 = vld [vmem:[%s6513_s1 + $0x5a0] ss:$16 sps:$4 sm:$0xff]  }
  0x7c   :  { %1497 = vmatprep.subr.bf16.mxu0 %v4493_v5  ;;  %1661 = vmatprep.subr.bf16.mxu1 %v4496_v6  ;;  %v4578_v5 = vld [vmem:[%s6513_s1 + $0x5a8] ss:$16 sps:$4 sm:$0xff]   ;;  %v4583_v6 = vld [vmem:[%s6513_s1 + $0x5c4] ss:$16 sps:$4 sm:$0xff]  }
  0x7f   :  { %1498 = vmatpush1.bf16.msra.mxu0 %v4491_v7  ;;  %1662 = vmatpush1.bf16.msra.mxu1 %v4494_v8  ;;  %v4586_v7 = vld [vmem:[%s6513_s1 + $0x5cc] ss:$16 sps:$4 sm:$0xff]   ;;  %v4581_v8 = vld [vmem:[%s6513_s1 + $0x5c0] ss:$16 sps:$4 sm:$0xff]  }
  0x80   :  { %1508 = vmatprep.subr.bf16.mxu0 %v4499_v9  ;;  %1672 = vmatprep.subr.bf16.mxu1 %v4502_v10  ;;  %v4584_v9 = vld [vmem:[%s6513_s1 + $0x5c8] ss:$16 sps:$4 sm:$0xff]   ;;  %v4589_v10 = vld [vmem:[%s6513_s1 + $0x5e4] ss:$16 sps:$4 sm:$0xff]  }
  0x82   :  { %1500 = vmatmul.mubr.bf16.vlgmr.msra.gmra.mrb[0].mxu0 %v3722_v12  ;;  %1664 = vmatmul.mubr.bf16.vlgmr.msra.gmra.mrb[0].mxu1 %v3722_v12  ;;  %v4587_v12 = vld [vmem:[%s6513_s1 + $0x5e0] ss:$16 sps:$4 sm:$0xff]  }
  0x83   :  { %1509 = vmatpush1.bf16.msra.mxu0 %v4497_v11  ;;  %1673 = vmatpush1.bf16.msra.mxu1 %v4500_v13  ;;  %v4592_v11 = vld [vmem:[%s6513_s1 + $0x5ec] ss:$16 sps:$4 sm:$0xff]   ;;  %v4590_v13 = vld [vmem:[%s6513_s1 + $0x5e8] ss:$16 sps:$4 sm:$0xff]  }
  0x84   :  { %1510 = vmatprep.subr.bf16.mxu0 %v4505_v14  ;;  %1674 = vmatprep.subr.bf16.mxu1 %v4508_v16  ;;  %v4595_v14 = vld [vmem:[%s6513_s1 + $0x604] ss:$16 sps:$4 sm:$0xff]   ;;  %v4593_v16 = vld [vmem:[%s6513_s1 + $0x600] ss:$16 sps:$4 sm:$0xff]  }
  0x85   :  { %1540 = vmatprep.mubr.bf16.mxu0 %v3725_v19  ;;  %1704 = vmatprep.mubr.bf16.mxu1 %v3725_v19  ;;  %v3724_v19 = vcombine.low %v5438_v17, %v5438_v17  ;;  %v4602_v17 = vld [vmem:[%s6513_s1 + $0x628] ss:$16 sps:$4 sm:$0xff]  }
  0x87   :  { %1511 = vmatpush1.bf16.msra.mxu0 %v4503_v18  ;;  %1675 = vmatpush1.bf16.msra.mxu1 %v4506_v20  ;;  %v4596_v18 = vld [vmem:[%s6513_s1 + $0x608] ss:$16 sps:$4 sm:$0xff]   ;;  %v4601_v20 = vld [vmem:[%s6513_s1 + $0x624] ss:$16 sps:$4 sm:$0xff]  }
  0x88   :  { %1512 = vmatprep.subr.bf16.mxu0 %v4511_v21  ;;  %1676 = vmatprep.subr.bf16.mxu1 %v4514_v22  ;;  %v4604_v21 = vld [vmem:[%s6513_s1 + $0x62c] ss:$16 sps:$4 sm:$0xff]   ;;  %v4599_v22 = vld [vmem:[%s6513_s1 + $0x620] ss:$16 sps:$4 sm:$0xff]  }
  0x8b   :  { %1513 = vmatpush1.bf16.msra.mxu0 %v4509_v23  ;;  %1677 = vmatpush1.bf16.msra.mxu1 %v4512_v24  ;;  %v4607_v23 = vld [vmem:[%s6513_s1 + $0x644] ss:$16 sps:$4 sm:$0xff]   ;;  %v4610_v24 = vld [vmem:[%s6513_s1 + $0x64c] ss:$16 sps:$4 sm:$0xff]  }
  0x8c   :  { %1514 = vmatprep.subr.bf16.mxu0 %v4517_v25  ;;  %1678 = vmatprep.subr.bf16.mxu1 %v4520_v26  ;;  %v4605_v25 = vld [vmem:[%s6513_s1 + $0x640] ss:$16 sps:$4 sm:$0xff]   ;;  %v4608_v26 = vld [vmem:[%s6513_s1 + $0x648] ss:$16 sps:$4 sm:$0xff]  }
  0x8f   :  { %1515 = vmatpush1.bf16.msra.mxu0 %v4515_v27  ;;  %1679 = vmatpush1.bf16.msra.mxu1 %v4518_v28  ;;  %v4613_v27 = vld [vmem:[%s6513_s1 + $0x664] ss:$16 sps:$4 sm:$0xff]   ;;  %v4616_v28 = vld [vmem:[%s6513_s1 + $0x66c] ss:$16 sps:$4 sm:$0xff]  }
  0x90   :  { %1516 = vmatprep.subr.bf16.mxu0 %v4523_v29  ;;  %1680 = vmatprep.subr.bf16.mxu1 %v4526_v30  ;;  %v4611_v29 = vld [vmem:[%s6513_s1 + $0x660] ss:$16 sps:$4 sm:$0xff]   ;;  %v4614_v30 = vld [vmem:[%s6513_s1 + $0x668] ss:$16 sps:$4 sm:$0xff]  }
  0x93   :  { %1517 = vmatpush1.bf16.msra.mxu0 %v4521_v31  ;;  %1681 = vmatpush1.bf16.msra.mxu1 %v4524_v32  ;;  %v4619_v31 = vld [vmem:[%s6513_s1 + $0x684] ss:$16 sps:$4 sm:$0xff]   ;;  %v4622_v32 = vld [vmem:[%s6513_s1 + $0x68c] ss:$16 sps:$4 sm:$0xff]  }
  0x94   :  { %1518 = vmatprep.subr.bf16.mxu0 %v4529_v33  ;;  %1682 = vmatprep.subr.bf16.mxu1 %v4532_v34  ;;  %v4617_v33 = vld [vmem:[%s6513_s1 + $0x680] ss:$16 sps:$4 sm:$0xff]   ;;  %v4620_v34 = vld [vmem:[%s6513_s1 + $0x688] ss:$16 sps:$4 sm:$0xff]  }
  0x97   :  { %1519 = vmatpush1.bf16.msra.mxu0 %v4527_v35  ;;  %1683 = vmatpush1.bf16.msra.mxu1 %v4530_v36  ;;  %v4625_v35 = vld [vmem:[%s6513_s1 + $0x6a4] ss:$16 sps:$4 sm:$0xff]   ;;  %v4628_v36 = vld [vmem:[%s6513_s1 + $0x6ac] ss:$16 sps:$4 sm:$0xff]  }
  0x98   :  { %1520 = vmatprep.subr.bf16.mxu0 %v4535_v37  ;;  %1684 = vmatprep.subr.bf16.mxu1 %v4538_v38  ;;  %v4623_v37 = vld [vmem:[%s6513_s1 + $0x6a0] ss:$16 sps:$4 sm:$0xff]   ;;  %v4626_v38 = vld [vmem:[%s6513_s1 + $0x6a8] ss:$16 sps:$4 sm:$0xff]  }
  0x9b   :  { %1521 = vmatpush1.bf16.msra.mxu0 %v4533_v39  ;;  %1685 = vmatpush1.bf16.msra.mxu1 %v4536_v40  ;;  %v4631_v39 = vld [vmem:[%s6513_s1 + $0x6c4] ss:$16 sps:$4 sm:$0xff]   ;;  %v4634_v40 = vld [vmem:[%s6513_s1 + $0x6cc] ss:$16 sps:$4 sm:$0xff]  }
  0x9c   :  { %1522 = vmatprep.subr.bf16.mxu0 %v4541_v41  ;;  %1686 = vmatprep.subr.bf16.mxu1 %v4544_v42  ;;  %v4629_v41 = vld [vmem:[%s6513_s1 + $0x6c0] ss:$16 sps:$4 sm:$0xff]   ;;  %v4632_v42 = vld [vmem:[%s6513_s1 + $0x6c8] ss:$16 sps:$4 sm:$0xff]  }
  0x9f   :  { %1523 = vmatpush1.bf16.msra.mxu0 %v4539_v43  ;;  %1687 = vmatpush1.bf16.msra.mxu1 %v4542_v44  ;;  %v30_v43 = vld [vmem:[%s6514_s0 + $0x18] sm:$0xf]  ;;  %v4637_v44 = vld [vmem:[%s6513_s1 + $0x6e4] ss:$16 sps:$4 sm:$0xff]  }
  0xa0   :  { %1524 = vmatprep.subr.bf16.mxu0 %v4547_v45  ;;  %1688 = vmatprep.subr.bf16.mxu1 %v4550_v46  ;;  %v4640_v45 = vld [vmem:[%s6513_s1 + $0x6ec] ss:$16 sps:$4 sm:$0xff]   ;;  %v4635_v46 = vld [vmem:[%s6513_s1 + $0x6e0] ss:$16 sps:$4 sm:$0xff]  }
  0xa3   :  { %1525 = vmatpush1.bf16.msra.mxu0 %v4545_v47  ;;  %1689 = vmatpush1.bf16.msra.mxu1 %v4548_v49  ;;  %v4638_v47 = vld [vmem:[%s6513_s1 + $0x6e8] ss:$16 sps:$4 sm:$0xff]   ;;  %v34_v49 = vmax.bf16 %v4977_v48, %v30_v43  ;;  %v4730_v43 = vld [vmem:[%s6515_s3 + $0x2ac] ss:$24 sps:$4 sm:$0xff]  }
  0xa4   :  { %1526 = vmatprep.subr.bf16.mxu0 %v4553_v50  ;;  %1690 = vmatprep.subr.bf16.mxu1 %v4556_v51  ;;  %v4643_v50 = vld [vmem:[%s6515_s3 + $0x4] ss:$24 sps:$4 sm:$0xff]  }
  0xa5   :  { %v4646_v51 = vld [vmem:[%s6515_s3 + $0xc] ss:$24 sps:$4 sm:$0xff]  }
  0xa7   :  { %1527 = vmatpush1.bf16.msra.mxu0 %v4551_v52  ;;  %1691 = vmatpush1.bf16.msra.mxu1 %v4554_v53  ;;  %v4641_v52 = vld [vmem:[%s6515_s3] ss:$24 sps:$4 sm:$0xff]   ;;  %v3726_v53 = vcombine.low %v34_v49, %v34_v49  ;;  %v4731_v49 = vld [vmem:[%s6515_s3 + $0x2d0] ss:$24 sps:$4 sm:$0xff]  }
  0xa8   :  { %1528 = vmatprep.subr.bf16.mxu0 %v4559_v54  ;;  %1692 = vmatprep.subr.bf16.mxu1 %v4562_v55  ;;  %v4649_v54 = vld [vmem:[%s6515_s3 + $0x34] ss:$24 sps:$4 sm:$0xff]  }
  0xa9   :  { %v4652_v55 = vld [vmem:[%s6515_s3 + $0x3c] ss:$24 sps:$4 sm:$0xff]  }
  0xab   :  { %1529 = vmatpush1.bf16.msra.mxu0 %v4557_v56  ;;  %1693 = vmatpush1.bf16.msra.mxu1 %v4560_v57  ;;  %v4647_v56 = vld [vmem:[%s6515_s3 + $0x30] ss:$24 sps:$4 sm:$0xff]  }
  0xac   :  { %1530 = vmatprep.subr.bf16.mxu0 %v4565_v58  ;;  %1694 = vmatprep.subr.bf16.mxu1 %v4568_v59  ;;  %v4650_v57 = vld [vmem:[%s6515_s3 + $0x38] ss:$24 sps:$4 sm:$0xff]   ;;  %v4655_v58 = vld [vmem:[%s6515_s3 + $0x64] ss:$24 sps:$4 sm:$0xff]  }
  0xad   :  { %v4658_v59 = vld [vmem:[%s6515_s3 + $0x6c] ss:$24 sps:$4 sm:$0xff]  }
  0xaf   :  { %1531 = vmatpush1.bf16.msra.mxu0 %v4563_v60  ;;  %1695 = vmatpush1.bf16.msra.mxu1 %v4566_v61  ;;  %v4653_v60 = vld [vmem:[%s6515_s3 + $0x60] ss:$24 sps:$4 sm:$0xff]  }
  0xb0   :  { %1532 = vmatprep.subr.bf16.mxu0 %v4571_v62  ;;  %1696 = vmatprep.subr.bf16.mxu1 %v4574_v63  ;;  %v4656_v61 = vld [vmem:[%s6515_s3 + $0x68] ss:$24 sps:$4 sm:$0xff]   ;;  %v4661_v62 = vld [vmem:[%s6515_s3 + $0x94] ss:$24 sps:$4 sm:$0xff]  }
  0xb1   :  { %v4664_v63 = vld [vmem:[%s6515_s3 + $0x9c] ss:$24 sps:$4 sm:$0xff]  }
  0xb3   :  { %1533 = vmatpush1.bf16.msra.mxu0 %v4569_v0  ;;  %1697 = vmatpush1.bf16.msra.mxu1 %v4572_v1  ;;  %v4659_v0 = vld [vmem:[%s6515_s3 + $0x90] ss:$24 sps:$4 sm:$0xff]  }
  0xb4   :  { %1534 = vmatprep.subr.bf16.mxu0 %v4577_v2  ;;  %1698 = vmatprep.subr.bf16.mxu1 %v4580_v3  ;;  %v4662_v1 = vld [vmem:[%s6515_s3 + $0x98] ss:$24 sps:$4 sm:$0xff]   ;;  %v4667_v2 = vld [vmem:[%s6515_s3 + $0xc4] ss:$24 sps:$4 sm:$0xff]  }
  0xb5   :  { %v4670_v3 = vld [vmem:[%s6515_s3 + $0xcc] ss:$24 sps:$4 sm:$0xff]  }
  0xb7   :  { %1535 = vmatpush1.bf16.msra.mxu0 %v4575_v4  ;;  %1699 = vmatpush1.bf16.msra.mxu1 %v4578_v5  ;;  %v4665_v4 = vld [vmem:[%s6515_s3 + $0xc0] ss:$24 sps:$4 sm:$0xff]  }
  0xb8   :  { %1536 = vmatprep.subr.bf16.mxu0 %v4583_v6  ;;  %1700 = vmatprep.subr.bf16.mxu1 %v4586_v7  ;;  %v4668_v5 = vld [vmem:[%s6515_s3 + $0xc8] ss:$24 sps:$4 sm:$0xff]   ;;  %v4673_v6 = vld [vmem:[%s6515_s3 + $0xf4] ss:$24 sps:$4 sm:$0xff]  }
  0xb9   :  { %v4676_v7 = vld [vmem:[%s6515_s3 + $0xfc] ss:$24 sps:$4 sm:$0xff]  }
  0xbb   :  { %1537 = vmatpush1.bf16.msra.mxu0 %v4581_v8  ;;  %1701 = vmatpush1.bf16.msra.mxu1 %v4584_v9  ;;  %v4671_v8 = vld [vmem:[%s6515_s3 + $0xf0] ss:$24 sps:$4 sm:$0xff]  }
  0xbc   :  { %1538 = vmatprep.subr.bf16.mxu0 %v4589_v10  ;;  %1702 = vmatprep.subr.bf16.mxu1 %v4592_v11  ;;  %v4674_v9 = vld [vmem:[%s6515_s3 + $0xf8] ss:$24 sps:$4 sm:$0xff]   ;;  %v4679_v10 = vld [vmem:[%s6515_s3 + $0x124] ss:$24 sps:$4 sm:$0xff]  }
  0xbd   :  { %v4682_v11 = vld [vmem:[%s6515_s3 + $0x12c] ss:$24 sps:$4 sm:$0xff]  }
  0xbf   :  { %1539 = vmatpush1.bf16.msra.mxu0 %v4587_v12  ;;  %1703 = vmatpush1.bf16.msra.mxu1 %v4590_v13  ;;  %v4677_v12 = vld [vmem:[%s6515_s3 + $0x120] ss:$24 sps:$4 sm:$0xff]  }
  0xc0   :  { %1549 = vmatprep.subr.bf16.mxu0 %v4595_v14  ;;  %1713 = vmatprep.subr.bf16.mxu1 %v4598_v15  ;;  %v4680_v13 = vld [vmem:[%s6515_s3 + $0x128] ss:$24 sps:$4 sm:$0xff]   ;;  %v4685_v14 = vld [vmem:[%s6515_s3 + $0x154] ss:$24 sps:$4 sm:$0xff]  }
  0xc1   :  { %v4688_v15 = vld [vmem:[%s6515_s3 + $0x15c] ss:$24 sps:$4 sm:$0xff]  }
  0xc2   :  { %1541 = vmatmul.mubr.bf16.vlgmr.msra.gmra.mrb[0].mxu0 %v3724_v19  ;;  %1705 = vmatmul.mubr.bf16.vlgmr.msra.gmra.mrb[0].mxu1 %v3724_v19  ;;  %v4691_v19 = vld [vmem:[%s6515_s3 + $0x184] ss:$24 sps:$4 sm:$0xff]  }
  0xc3   :  { %1550 = vmatpush1.bf16.msra.mxu0 %v4593_v16  ;;  %1714 = vmatpush1.bf16.msra.mxu1 %v4596_v18  ;;  %v4683_v16 = vld [vmem:[%s6515_s3 + $0x150] ss:$24 sps:$4 sm:$0xff]  }
  0xc4   :  { %1551 = vmatprep.subr.bf16.mxu0 %v4601_v20  ;;  %1715 = vmatprep.subr.bf16.mxu1 %v4604_v21  ;;  %v4686_v18 = vld [vmem:[%s6515_s3 + $0x158] ss:$24 sps:$4 sm:$0xff]   ;;  %v4694_v20 = vld [vmem:[%s6515_s3 + $0x18c] ss:$24 sps:$4 sm:$0xff]  }
  0xc5   :  { %1581 = vmatprep.mubr.bf16.mxu0 %v4977_v48  ;;  %1745 = vmatprep.mubr.bf16.mxu1 %v4977_v48  ;;  %v4644_v48 = vld [vmem:[%s6515_s3 + $0x8] ss:$24 sps:$4 sm:$0xff]  }
  0xc6   :  { %v4689_v21 = vld [vmem:[%s6515_s3 + $0x180] ss:$24 sps:$4 sm:$0xff]  }
  0xc7   :  { %1552 = vmatpush1.bf16.msra.mxu0 %v4599_v22  ;;  %1716 = vmatpush1.bf16.msra.mxu1 %v4602_v17  ;;  %v4692_v22 = vld [vmem:[%s6515_s3 + $0x188] ss:$24 sps:$4 sm:$0xff]   ;;  %v4697_v17 = vld [vmem:[%s6515_s3 + $0x1b4] ss:$24 sps:$4 sm:$0xff]  }
  0xc8   :  { %1553 = vmatprep.subr.bf16.mxu0 %v4607_v23  ;;  %1717 = vmatprep.subr.bf16.mxu1 %v4610_v24  ;;  %v4700_v23 = vld [vmem:[%s6515_s3 + $0x1bc] ss:$24 sps:$4 sm:$0xff]   ;;  %v4695_v24 = vld [vmem:[%s6515_s3 + $0x1b0] ss:$24 sps:$4 sm:$0xff]  }
  0xcb   :  { %1554 = vmatpush1.bf16.msra.mxu0 %v4605_v25  ;;  %1718 = vmatpush1.bf16.msra.mxu1 %v4608_v26  ;;  %v4698_v25 = vld [vmem:[%s6515_s3 + $0x1b8] ss:$24 sps:$4 sm:$0xff]   ;;  %v4703_v26 = vld [vmem:[%s6515_s3 + $0x1e4] ss:$24 sps:$4 sm:$0xff]  }
  0xcc   :  { %1555 = vmatprep.subr.bf16.mxu0 %v4613_v27  ;;  %1719 = vmatprep.subr.bf16.mxu1 %v4616_v28  ;;  %v4706_v27 = vld [vmem:[%s6515_s3 + $0x1ec] ss:$24 sps:$4 sm:$0xff]   ;;  %v4701_v28 = vld [vmem:[%s6515_s3 + $0x1e0] ss:$24 sps:$4 sm:$0xff]  }
  0xcf   :  { %1556 = vmatpush1.bf16.msra.mxu0 %v4611_v29  ;;  %1720 = vmatpush1.bf16.msra.mxu1 %v4614_v30  ;;  %v4704_v29 = vld [vmem:[%s6515_s3 + $0x1e8] ss:$24 sps:$4 sm:$0xff]   ;;  %v4709_v30 = vld [vmem:[%s6515_s3 + $0x214] ss:$24 sps:$4 sm:$0xff]  }
  0xd0   :  { %1557 = vmatprep.subr.bf16.mxu0 %v4619_v31  ;;  %1721 = vmatprep.subr.bf16.mxu1 %v4622_v32  ;;  %v4712_v31 = vld [vmem:[%s6515_s3 + $0x21c] ss:$24 sps:$4 sm:$0xff]   ;;  %v4707_v32 = vld [vmem:[%s6515_s3 + $0x210] ss:$24 sps:$4 sm:$0xff]  }
  0xd3   :  { %1558 = vmatpush1.bf16.msra.mxu0 %v4617_v33  ;;  %1722 = vmatpush1.bf16.msra.mxu1 %v4620_v34  ;;  %v4710_v33 = vld [vmem:[%s6515_s3 + $0x218] ss:$24 sps:$4 sm:$0xff]   ;;  %v4715_v34 = vld [vmem:[%s6515_s3 + $0x244] ss:$24 sps:$4 sm:$0xff]  }
  0xd4   :  { %1559 = vmatprep.subr.bf16.mxu0 %v4625_v35  ;;  %1723 = vmatprep.subr.bf16.mxu1 %v4628_v36  ;;  %v4718_v35 = vld [vmem:[%s6515_s3 + $0x24c] ss:$24 sps:$4 sm:$0xff]   ;;  %v4713_v36 = vld [vmem:[%s6515_s3 + $0x240] ss:$24 sps:$4 sm:$0xff]  }
  0xd7   :  { %1560 = vmatpush1.bf16.msra.mxu0 %v4623_v37  ;;  %1724 = vmatpush1.bf16.msra.mxu1 %v4626_v38  ;;  %v4716_v37 = vld [vmem:[%s6515_s3 + $0x248] ss:$24 sps:$4 sm:$0xff]   ;;  %v4721_v38 = vld [vmem:[%s6515_s3 + $0x274] ss:$24 sps:$4 sm:$0xff]  }
  0xd8   :  { %1561 = vmatprep.subr.bf16.mxu0 %v4631_v39  ;;  %1725 = vmatprep.subr.bf16.mxu1 %v4634_v40  ;;  %v4724_v39 = vld [vmem:[%s6515_s3 + $0x27c] ss:$24 sps:$4 sm:$0xff]   ;;  %v4719_v40 = vld [vmem:[%s6515_s3 + $0x270] ss:$24 sps:$4 sm:$0xff]  }
  0xdb   :  { %1562 = vmatpush1.bf16.msra.mxu0 %v4629_v41  ;;  %1726 = vmatpush1.bf16.msra.mxu1 %v4632_v42  ;;  %v4722_v41 = vld [vmem:[%s6515_s3 + $0x278] ss:$24 sps:$4 sm:$0xff]   ;;  %v4727_v42 = vld [vmem:[%s6515_s3 + $0x2a4] ss:$24 sps:$4 sm:$0xff]  }
  0xdc   :  { %1563 = vmatprep.subr.bf16.mxu0 %v4637_v44  ;;  %1727 = vmatprep.subr.bf16.mxu1 %v4640_v45  ;;  %v4725_v44 = vld [vmem:[%s6515_s3 + $0x2a0] ss:$24 sps:$4 sm:$0xff]  }
  0xdd   :  { %v4728_v45 = vld [vmem:[%s6515_s3 + $0x2a8] ss:$24 sps:$4 sm:$0xff]  }
  0xdf   :  { %1564 = vmatpush1.bf16.msra.mxu0 %v4635_v46  ;;  %1728 = vmatpush1.bf16.msra.mxu1 %v4638_v47  ;;  %v4733_v46 = vld [vmem:[%s6515_s3 + $0x2d4] ss:$24 sps:$4 sm:$0xff]  }
  0xe0   :  { %2946 = vmatprep.subr.bf16.mxu0 %v4643_v50  ;;  %3028 = vmatprep.subr.bf16.mxu1 %v4646_v51  ;;  %v4736_v47 = vld [vmem:[%s6515_s3 + $0x2dc] ss:$24 sps:$4 sm:$0xff]   ;;  %v4734_v50 = vld [vmem:[%s6515_s3 + $0x2d8] ss:$24 sps:$4 sm:$0xff]  }
  0xe1   :  { %v4739_v51 = vld [vmem:[%s6515_s3 + $0x304] ss:$24 sps:$4 sm:$0xff]  }
  0xe2   :  { %1582 = vmatmul.mubr.bf16.vlgmr.msra.gmra.mrb[0].mxu0 %v3726_v53  ;;  %1746 = vmatmul.mubr.bf16.vlgmr.msra.gmra.mrb[0].mxu1 %v3726_v53 }
  0xe3   :  { %2947 = vmatpush1.bf16.msra.mxu0 %v4641_v52  ;;  %3029 = vmatpush1.bf16.msra.mxu1 %v4644_v48  ;;  %v4742_v52 = vld [vmem:[%s6515_s3 + $0x30c] ss:$24 sps:$4 sm:$0xff]   ;;  %v261_v48 = vlaneseq }
  0xe4   :  { %2948 = vmatprep.subr.bf16.mxu0 %v4649_v54  ;;  %3030 = vmatprep.subr.bf16.mxu1 %v4652_v55  ;;  %v5924_v55 = vld [vmem:[%s6516_s2] sm:$0xf] }
  0xe5   :  { %v5918_v53 = vshrl.u32 %v261_v48, 7  ;;  %v4799_v48 = vld [vmem:[%s6515_s3 + $0x4e4] ss:$24 sps:$4 sm:$0xff]  }
  0xe7   :  { %2949 = vmatpush1.bf16.msra.mxu0 %v4647_v56  ;;  %3031 = vmatpush1.bf16.msra.mxu1 %v4650_v57  ;;  %v263_v54 = vsub.s32 0, %v5918_v53  ;;  %v267_v56 = vsub.s32 1, %v5918_v53  ;;  %v275_v57 = vsub.s32 3, %v5918_v53 }
  0xe8   :  { %2950 = vmatprep.subr.bf16.mxu0 %v4655_v58  ;;  %3032 = vmatprep.subr.bf16.mxu1 %v4658_v59 }
  0xe9   :  { %v264_v58 = vrot.slane %v5924_v55, %v263_v54  ;;  %v268_v59 = vrot.slane %v5924_v55, %v267_v56 }
  0xeb   :  { %2951 = vmatpush1.bf16.msra.mxu0 %v4653_v60  ;;  %3033 = vmatpush1.bf16.msra.mxu1 %v4656_v61  ;;  %v276_v60 = vrot.slane %v5924_v55, %v275_v57 }
  0xec   :  { %2952 = vmatprep.subr.bf16.mxu0 %v4661_v62  ;;  %3034 = vmatprep.subr.bf16.mxu1 %v4664_v63 }
  0xef   :  { %2953 = vmatpush1.bf16.msra.mxu0 %v4659_v0  ;;  %3035 = vmatpush1.bf16.msra.mxu1 %v4662_v1 }
  0xf0   :  { %2954 = vmatprep.subr.bf16.mxu0 %v4667_v2  ;;  %3036 = vmatprep.subr.bf16.mxu1 %v4670_v3 }
  0xf3   :  { %2955 = vmatpush1.bf16.msra.mxu0 %v4665_v4  ;;  %3037 = vmatpush1.bf16.msra.mxu1 %v4668_v5 }
  0xf4   :  { %2956 = vmatprep.subr.bf16.mxu0 %v4673_v6  ;;  %3038 = vmatprep.subr.bf16.mxu1 %v4676_v7 }
  0xf7   :  { %2957 = vmatpush1.bf16.msra.mxu0 %v4671_v8  ;;  %3039 = vmatpush1.bf16.msra.mxu1 %v4674_v9 }
  0xf8   :  { %2958 = vmatprep.subr.bf16.mxu0 %v4679_v10  ;;  %3040 = vmatprep.subr.bf16.mxu1 %v4682_v11 }
  0xfb   :  { %2959 = vmatpush1.bf16.msra.mxu0 %v4677_v12  ;;  %3041 = vmatpush1.bf16.msra.mxu1 %v4680_v13  ;;  %v4737_v12 = vld [vmem:[%s6515_s3 + $0x300] ss:$24 sps:$4 sm:$0xff]  }
  0xfc   :  { %2960 = vmatprep.subr.bf16.mxu0 %v4685_v14  ;;  %3042 = vmatprep.subr.bf16.mxu1 %v4688_v15  ;;  %v4740_v13 = vld [vmem:[%s6515_s3 + $0x308] ss:$24 sps:$4 sm:$0xff]   ;;  %v4745_v15 = vld [vmem:[%s6515_s3 + $0x334] ss:$24 sps:$4 sm:$0xff]  }
  0xff   :  { %2961 = vmatpush1.bf16.msra.mxu0 %v4683_v16  ;;  %3043 = vmatpush1.bf16.msra.mxu1 %v4686_v18  ;;  %v4748_v16 = vld [vmem:[%s6515_s3 + $0x33c] ss:$24 sps:$4 sm:$0xff]  }
 0x100   :  { %2962 = vmatprep.subr.bf16.mxu0 %v4691_v19  ;;  %3044 = vmatprep.subr.bf16.mxu1 %v4694_v20  ;;  %v4743_v19 = vld [vmem:[%s6515_s3 + $0x330] ss:$24 sps:$4 sm:$0xff]  }
 0x101   :  { %v4746_v20 = vld [vmem:[%s6515_s3 + $0x338] ss:$24 sps:$4 sm:$0xff]  }
 0x103   :  { %2963 = vmatpush1.bf16.msra.mxu0 %v4689_v21  ;;  %3045 = vmatpush1.bf16.msra.mxu1 %v4692_v22  ;;  %v4751_v21 = vld [vmem:[%s6515_s3 + $0x364] ss:$24 sps:$4 sm:$0xff]  }
 0x104   :  { %2964 = vmatprep.subr.bf16.mxu0 %v4697_v17  ;;  %3046 = vmatprep.subr.bf16.mxu1 %v4700_v23  ;;  %v4754_v22 = vld [vmem:[%s6515_s3 + $0x36c] ss:$24 sps:$4 sm:$0xff]   ;;  %v4749_v17 = vld [vmem:[%s6515_s3 + $0x360] ss:$24 sps:$4 sm:$0xff]  }
 0x105   :  { %v4752_v23 = vld [vmem:[%s6515_s3 + $0x368] ss:$24 sps:$4 sm:$0xff]  }
 0x107   :  { %2965 = vmatpush1.bf16.msra.mxu0 %v4695_v24  ;;  %3047 = vmatpush1.bf16.msra.mxu1 %v4698_v25  ;;  %v4757_v24 = vld [vmem:[%s6515_s3 + $0x394] ss:$24 sps:$4 sm:$0xff]  }
 0x108   :  { %2966 = vmatprep.subr.bf16.mxu0 %v4703_v26  ;;  %3048 = vmatprep.subr.bf16.mxu1 %v4706_v27  ;;  %v4760_v25 = vld [vmem:[%s6515_s3 + $0x39c] ss:$24 sps:$4 sm:$0xff]   ;;  %v4755_v26 = vld [vmem:[%s6515_s3 + $0x390] ss:$24 sps:$4 sm:$0xff]  }
 0x109   :  { %v4758_v27 = vld [vmem:[%s6515_s3 + $0x398] ss:$24 sps:$4 sm:$0xff]  }
 0x10b   :  { %2967 = vmatpush1.bf16.msra.mxu0 %v4701_v28  ;;  %3049 = vmatpush1.bf16.msra.mxu1 %v4704_v29  ;;  %v4763_v28 = vld [vmem:[%s6515_s3 + $0x3c4] ss:$24 sps:$4 sm:$0xff]  }
 0x10c   :  { %2968 = vmatprep.subr.bf16.mxu0 %v4709_v30  ;;  %3050 = vmatprep.subr.bf16.mxu1 %v4712_v31  ;;  %v4766_v29 = vld [vmem:[%s6515_s3 + $0x3cc] ss:$24 sps:$4 sm:$0xff]   ;;  %v4761_v30 = vld [vmem:[%s6515_s3 + $0x3c0] ss:$24 sps:$4 sm:$0xff]  }
 0x10d   :  { %v4764_v31 = vld [vmem:[%s6515_s3 + $0x3c8] ss:$24 sps:$4 sm:$0xff]  }
 0x10f   :  { %2969 = vmatpush1.bf16.msra.mxu0 %v4707_v32  ;;  %3051 = vmatpush1.bf16.msra.mxu1 %v4710_v33  ;;  %v4769_v32 = vld [vmem:[%s6515_s3 + $0x3f4] ss:$24 sps:$4 sm:$0xff]  }
 0x110   :  { %2970 = vmatprep.subr.bf16.mxu0 %v4715_v34  ;;  %3052 = vmatprep.subr.bf16.mxu1 %v4718_v35  ;;  %v4772_v33 = vld [vmem:[%s6515_s3 + $0x3fc] ss:$24 sps:$4 sm:$0xff]   ;;  %v4767_v34 = vld [vmem:[%s6515_s3 + $0x3f0] ss:$24 sps:$4 sm:$0xff]  }
 0x111   :  { %v4770_v35 = vld [vmem:[%s6515_s3 + $0x3f8] ss:$24 sps:$4 sm:$0xff]  }
 0x113   :  { %2971 = vmatpush1.bf16.msra.mxu0 %v4713_v36  ;;  %3053 = vmatpush1.bf16.msra.mxu1 %v4716_v37  ;;  %v4775_v36 = vld [vmem:[%s6515_s3 + $0x424] ss:$24 sps:$4 sm:$0xff]  }
 0x114   :  { %2972 = vmatprep.subr.bf16.mxu0 %v4721_v38  ;;  %3054 = vmatprep.subr.bf16.mxu1 %v4724_v39  ;;  %v4778_v37 = vld [vmem:[%s6515_s3 + $0x42c] ss:$24 sps:$4 sm:$0xff]   ;;  %v4773_v38 = vld [vmem:[%s6515_s3 + $0x420] ss:$24 sps:$4 sm:$0xff]  }
 0x115   :  { %v4776_v39 = vld [vmem:[%s6515_s3 + $0x428] ss:$24 sps:$4 sm:$0xff]  }
 0x117   :  { %2973 = vmatpush1.bf16.msra.mxu0 %v4719_v40  ;;  %3055 = vmatpush1.bf16.msra.mxu1 %v4722_v41  ;;  %v4781_v40 = vld [vmem:[%s6515_s3 + $0x454] ss:$24 sps:$4 sm:$0xff]  }
 0x118   :  { %2974 = vmatprep.subr.bf16.mxu0 %v4727_v42  ;;  %3056 = vmatprep.subr.bf16.mxu1 %v4730_v43  ;;  %v4784_v41 = vld [vmem:[%s6515_s3 + $0x45c] ss:$24 sps:$4 sm:$0xff]   ;;  %v4779_v42 = vld [vmem:[%s6515_s3 + $0x450] ss:$24 sps:$4 sm:$0xff]  }
 0x119   :  { %v4782_v43 = vld [vmem:[%s6515_s3 + $0x458] ss:$24 sps:$4 sm:$0xff]  }
 0x11b   :  { %2975 = vmatpush1.bf16.msra.mxu0 %v4725_v44  ;;  %3057 = vmatpush1.bf16.msra.mxu1 %v4728_v45  ;;  %v4787_v44 = vld [vmem:[%s6515_s3 + $0x484] ss:$24 sps:$4 sm:$0xff]  }
 0x11c   :  { %2976 = vmatprep.subr.bf16.mxu0 %v4733_v46  ;;  %3058 = vmatprep.subr.bf16.mxu1 %v4736_v47  ;;  %v4790_v45 = vld [vmem:[%s6515_s3 + $0x48c] ss:$24 sps:$4 sm:$0xff]   ;;  %v4785_v46 = vld [vmem:[%s6515_s3 + $0x480] ss:$24 sps:$4 sm:$0xff]  }
 0x11d   :  { %v4788_v47 = vld [vmem:[%s6515_s3 + $0x488] ss:$24 sps:$4 sm:$0xff]  }
 0x11f   :  { %2977 = vmatpush1.bf16.msra.mxu0 %v4731_v49  ;;  %3059 = vmatpush1.bf16.msra.mxu1 %v4734_v50  ;;  %v4793_v49 = vld [vmem:[%s6515_s3 + $0x4b4] ss:$24 sps:$4 sm:$0xff]  }
 0x120   :  { %2987 = vmatprep.subr.bf16.mxu0 %v4739_v51  ;;  %3069 = vmatprep.subr.bf16.mxu1 %v4742_v52  ;;  %v4796_v50 = vld [vmem:[%s6515_s3 + $0x4bc] ss:$24 sps:$4 sm:$0xff]   ;;  %v4791_v51 = vld [vmem:[%s6515_s3 + $0x4b0] ss:$24 sps:$4 sm:$0xff]  }
 0x121   :  { %v4794_v52 = vld [vmem:[%s6515_s3 + $0x4b8] ss:$24 sps:$4 sm:$0xff]  }
 0x1b5   :  { %v1583_v61 = vpop.f32.mrb[0].mxu0  ;;  %v5937_v62 = vpop.f32.mrb[0].mxu1 }
 0x1b6   :  { %v4258_v63 = vadd.f32 %v1583_v61, %v264_v58  ;;  %v1585_v0 = vpop.f32.mrb[1].mxu0  ;;  %v1749_v1 = vpop.f32.mrb[1].mxu1  ;;  %v4802_v58 = vld [vmem:[%s6515_s3 + $0x4ec] ss:$24 sps:$4 sm:$0xff]  }
 0x1b7   :  { %v4259_v2 = vadd.f32 %v1585_v0, %v268_v59  ;;  %v4261_v3 = vadd.f32 %v1749_v1, %v276_v60  ;;  %v1587_v4 = vpop.f32.mrb[2].mxu0  ;;  %v1751_v5 = vpop.f32.mrb[2].mxu1  ;;  %v4797_v59 = vld [vmem:[%s6515_s3 + $0x4e0] ss:$24 sps:$4 sm:$0xff]   ;;  %v4805_v61 = vld [vmem:[%s6515_s3 + $0x514] ss:$24 sps:$4 sm:$0xff]  }
 0x1b8   :  { %v1754_v6 = vmax.f32 %v4258_v63, 0.0  ;;  %v1588_v7 = vpop.f32.mrb[3].mxu0  ;;  %v1752_v8 = vpop.f32.mrb[3].mxu1  ;;  %v4800_v60 = vld [vmem:[%s6515_s3 + $0x4e8] ss:$24 sps:$4 sm:$0xff]  }
 0x1b9   :  { %v1755_v9 = vmax.f32 %v4259_v2, 0.0  ;;  %v1757_v10 = vmax.f32 %v4261_v3, 0.0  ;;  %v4808_v63 = vld [vmem:[%s6515_s3 + $0x51c] ss:$24 sps:$4 sm:$0xff]   ;;  %v4803_v0 = vld [vmem:[%s6515_s3 + $0x510] ss:$24 sps:$4 sm:$0xff]  }
 0x1ba   :  { %v5947_v14 = vpack.c.bf16 %v1754_v6, %v1754_v6  ;;  %v4806_v1 = vld [vmem:[%s6515_s3 + $0x518] ss:$24 sps:$4 sm:$0xff]   ;;  %v4811_v2 = vld [vmem:[%s6515_s3 + $0x544] ss:$24 sps:$4 sm:$0xff]   ;;  %v4812_v5 = vld [vmem:[%s6515_s3 + $0x548] ss:$24 sps:$4 sm:$0xff]  }
 0x1bb   :  { %v5939_v11 = vpack.c.bf16 %v1755_v9, %v1755_v9  ;;  %v5957_v18 = vpack.c.bf16 %v1757_v10, %v1757_v10  ;;  %v4814_v3 = vld [vmem:[%s6515_s3 + $0x54c] ss:$24 sps:$4 sm:$0xff]   ;;  %v4809_v4 = vld [vmem:[%s6515_s3 + $0x540] ss:$24 sps:$4 sm:$0xff]   ;;  %v271_v6 = vsub.s32 2, %v5918_v53 }
 0x1bc   :  { %v4817_v7 = vld [vmem:[%s6515_s3 + $0x574] ss:$24 sps:$4 sm:$0xff]   ;;  %v4815_v9 = vld [vmem:[%s6515_s3 + $0x570] ss:$24 sps:$4 sm:$0xff]  }
 0x1bd   :  { %2978 = vmatprep.mubr.bf16.mxu0 %v5939_v11  ;;  %3060 = vmatprep.mubr.bf16.mxu1 %v5939_v11  ;;  %v4820_v8 = vld [vmem:[%s6515_s3 + $0x57c] ss:$24 sps:$4 sm:$0xff]   ;;  %v4818_v10 = vld [vmem:[%s6515_s3 + $0x578] ss:$24 sps:$4 sm:$0xff]  }
 0x1be   :  { %2979 = vmatmul.mubr.bf16.vlgmr.msra.gmra.mrb[4].mxu0 %v5947_v14  ;;  %3061 = vmatmul.mubr.bf16.vlgmr.msra.gmra.mrb[4].mxu1 %v5947_v14 }
 0x1bf   :  { %2988 = vmatpush1.bf16.msra.mxu0 %v4737_v12  ;;  %3070 = vmatpush1.bf16.msra.mxu1 %v4740_v13  ;;  %v272_v12 = vrot.slane %v5924_v55, %v271_v6  ;;  %v4823_v13 = vld [vmem:[%s6515_s3 + $0x5a4] ss:$24 sps:$4 sm:$0xff]   ;;  %v4824_v55 = vld [vmem:[%s6515_s3 + $0x5a8] ss:$24 sps:$4 sm:$0xff]  }
 0x1c0   :  { %3019 = vmatprep.mubr.bf16.mxu0 %v5957_v18  ;;  %3101 = vmatprep.mubr.bf16.mxu1 %v5957_v18 }
 0x1c1   :  { %2989 = vmatprep.subr.bf16.mxu0 %v4745_v15  ;;  %3071 = vmatprep.subr.bf16.mxu1 %v4748_v16  ;;  %v4826_v15 = vld [vmem:[%s6515_s3 + $0x5ac] ss:$24 sps:$4 sm:$0xff]   ;;  %v4821_v16 = vld [vmem:[%s6515_s3 + $0x5a0] ss:$24 sps:$4 sm:$0xff]  }
 0x1c3   :  { %2990 = vmatpush1.bf16.msra.mxu0 %v4743_v19  ;;  %3072 = vmatpush1.bf16.msra.mxu1 %v4746_v20  ;;  %v4260_v19 = vadd.f32 %v5937_v62, %v272_v12  ;;  %v4829_v20 = vld [vmem:[%s6515_s3 + $0x5d4] ss:$24 sps:$4 sm:$0xff]   ;;  %v4830_v62 = vld [vmem:[%s6515_s3 + $0x5d8] ss:$24 sps:$4 sm:$0xff]  }
 0x1c4   :  { %2991 = vmatprep.subr.bf16.mxu0 %v4751_v21  ;;  %3073 = vmatprep.subr.bf16.mxu1 %v4754_v22  ;;  %v4832_v21 = vld [vmem:[%s6515_s3 + $0x5dc] ss:$24 sps:$4 sm:$0xff]   ;;  %v4827_v22 = vld [vmem:[%s6515_s3 + $0x5d0] ss:$24 sps:$4 sm:$0xff]  }
 0x1c5   :  { %v4881_v12 = vld [vmem:[%s6515_s3 + $0x310] ss:$24 sps:$4 sm:$0xff]  }
 0x1c7   :  { %2992 = vmatpush1.bf16.msra.mxu0 %v4749_v17  ;;  %3074 = vmatpush1.bf16.msra.mxu1 %v4752_v23  ;;  %v1756_v17 = vmax.f32 %v4260_v19, 0.0  ;;  %v4835_v23 = vld [vmem:[%s6515_s3 + $0x14] ss:$24 sps:$4 sm:$0xff]  }
 0x1c8   :  { %2993 = vmatprep.subr.bf16.mxu0 %v4757_v24  ;;  %3075 = vmatprep.subr.bf16.mxu1 %v4760_v25  ;;  %v4833_v24 = vld [vmem:[%s6515_s3 + $0x10] ss:$24 sps:$4 sm:$0xff]   ;;  %v4895_v19 = vld [vmem:[%s6515_s3 + $0x3d4] ss:$24 sps:$4 sm:$0xff]  }
 0x1c9   :  { %v6148_v25 = vpack.c.bf16 %v1756_v17, %v1756_v17  ;;  %v4901_v17 = vld [vmem:[%s6515_s3 + $0x434] ss:$24 sps:$4 sm:$0xff]  }
 0x1cb   :  { %2994 = vmatpush1.bf16.msra.mxu0 %v4755_v26  ;;  %3076 = vmatpush1.bf16.msra.mxu1 %v4758_v27  ;;  %v4838_v26 = vld [vmem:[%s6515_s3 + $0x44] ss:$24 sps:$4 sm:$0xff]   ;;  %v4836_v27 = vld [vmem:[%s6515_s3 + $0x40] ss:$24 sps:$4 sm:$0xff]  }
 0x1cc   :  { %2995 = vmatprep.subr.bf16.mxu0 %v4763_v28  ;;  %3077 = vmatprep.subr.bf16.mxu1 %v4766_v29  ;;  %v4841_v28 = vld [vmem:[%s6515_s3 + $0x74] ss:$24 sps:$4 sm:$0xff]   ;;  %v4929_v29 = vld [vmem:[%s6517_s5 + $0x40] sm:$0xff]  }
 0x1cf   :  { %2996 = vmatpush1.bf16.msra.mxu0 %v4761_v30  ;;  %3078 = vmatpush1.bf16.msra.mxu1 %v4764_v31  ;;  %v4930_v30 = vld [vmem:[%s6517_s5] sm:$0xff]   ;;  %v4839_v31 = vld [vmem:[%s6515_s3 + $0x70] ss:$24 sps:$4 sm:$0xff]  }
 0x1d0   :  { %2997 = vmatprep.subr.bf16.mxu0 %v4769_v32  ;;  %3079 = vmatprep.subr.bf16.mxu1 %v4772_v33  ;;  %v4931_v32 = vld [vmem:[%s6517_s5 + $0x48] sm:$0xff]   ;;  %v4933_v33 = vld [vmem:[%s6517_s5 + $0x50] sm:$0xff]  }
 0x1d3   :  { %2998 = vmatpush1.bf16.msra.mxu0 %v4767_v34  ;;  %3080 = vmatpush1.bf16.msra.mxu1 %v4770_v35  ;;  %v4844_v34 = vld [vmem:[%s6515_s3 + $0xa4] ss:$24 sps:$4 sm:$0xff]   ;;  %v4842_v35 = vld [vmem:[%s6515_s3 + $0xa0] ss:$24 sps:$4 sm:$0xff]  }
 0x1d4   :  { %2999 = vmatprep.subr.bf16.mxu0 %v4775_v36  ;;  %3081 = vmatprep.subr.bf16.mxu1 %v4778_v37  ;;  %v4934_v36 = vld [vmem:[%s6517_s5 + $0x10] sm:$0xff]   ;;  %v4935_v37 = vld [vmem:[%s6517_s5 + $0x58] sm:$0xff]  }
 0x1d7   :  { %3000 = vmatpush1.bf16.msra.mxu0 %v4773_v38  ;;  %3082 = vmatpush1.bf16.msra.mxu1 %v4776_v39  ;;  %v4847_v38 = vld [vmem:[%s6515_s3 + $0xd4] ss:$24 sps:$4 sm:$0xff]   ;;  %v4845_v39 = vld [vmem:[%s6515_s3 + $0xd0] ss:$24 sps:$4 sm:$0xff]  }
 0x1d8   :  { %3001 = vmatprep.subr.bf16.mxu0 %v4781_v40  ;;  %3083 = vmatprep.subr.bf16.mxu1 %v4784_v41  ;;  %v4850_v40 = vld [vmem:[%s6515_s3 + $0x104] ss:$24 sps:$4 sm:$0xff]  }
 0x1d9   :  { %v4936_v41 = vld [vmem:[%s6517_s5 + $0x18] sm:$0xff]  }
 0x1db   :  { %3002 = vmatpush1.bf16.msra.mxu0 %v4779_v42  ;;  %3084 = vmatpush1.bf16.msra.mxu1 %v4782_v43  ;;  %v4937_v42 = vld [vmem:[%s6517_s5 + $0x60] sm:$0xff]  }
 0x1dc   :  { %3003 = vmatprep.subr.bf16.mxu0 %v4787_v44  ;;  %3085 = vmatprep.subr.bf16.mxu1 %v4790_v45  ;;  %v4938_v43 = vld [vmem:[%s6517_s5 + $0x20] sm:$0xff]   ;;  %v4939_v45 = vld [vmem:[%s6517_s5 + $0x68] sm:$0xff]  }
 0x1dd   :  { %v4848_v44 = vld [vmem:[%s6515_s3 + $0x100] ss:$24 sps:$4 sm:$0xff]  }
 0x1df   :  { %3004 = vmatpush1.bf16.msra.mxu0 %v4785_v46  ;;  %3086 = vmatpush1.bf16.msra.mxu1 %v4788_v47  ;;  %v4853_v46 = vld [vmem:[%s6515_s3 + $0x134] ss:$24 sps:$4 sm:$0xff]  }
 0x1e0   :  { %3005 = vmatprep.subr.bf16.mxu0 %v4793_v49  ;;  %3087 = vmatprep.subr.bf16.mxu1 %v4796_v50  ;;  %v4940_v47 = vld [vmem:[%s6517_s5 + $0x28] sm:$0xff]   ;;  %v4856_v50 = vld [vmem:[%s6515_s3 + $0x164] ss:$24 sps:$4 sm:$0xff]  }
 0x1e1   :  { %v4851_v49 = vld [vmem:[%s6515_s3 + $0x130] ss:$24 sps:$4 sm:$0xff]  }
 0x1e3   :  { %3006 = vmatpush1.bf16.msra.mxu0 %v4791_v51  ;;  %3088 = vmatpush1.bf16.msra.mxu1 %v4794_v52  ;;  %v4854_v51 = vld [vmem:[%s6515_s3 + $0x160] ss:$24 sps:$4 sm:$0xff]   ;;  %v4859_v52 = vld [vmem:[%s6515_s3 + $0x194] ss:$24 sps:$4 sm:$0xff]  }
 0x1e4   :  { %3007 = vmatprep.subr.bf16.mxu0 %v4799_v48  ;;  %3089 = vmatprep.subr.bf16.mxu1 %v4802_v58  ;;  %v4857_v48 = vld [vmem:[%s6515_s3 + $0x190] ss:$24 sps:$4 sm:$0xff]   ;;  %v4862_v58 = vld [vmem:[%s6515_s3 + $0x1c4] ss:$24 sps:$4 sm:$0xff]  }
 0x1e7   :  { %3008 = vmatpush1.bf16.msra.mxu0 %v4797_v59  ;;  %3090 = vmatpush1.bf16.msra.mxu1 %v4800_v60  ;;  %v4860_v59 = vld [vmem:[%s6515_s3 + $0x1c0] ss:$24 sps:$4 sm:$0xff]   ;;  %v4865_v60 = vld [vmem:[%s6515_s3 + $0x1f4] ss:$24 sps:$4 sm:$0xff]  }
 0x1e8   :  { %3009 = vmatprep.subr.bf16.mxu0 %v4805_v61  ;;  %3091 = vmatprep.subr.bf16.mxu1 %v4808_v63  ;;  %v4863_v61 = vld [vmem:[%s6515_s3 + $0x1f0] ss:$24 sps:$4 sm:$0xff]   ;;  %v4868_v63 = vld [vmem:[%s6515_s3 + $0x224] ss:$24 sps:$4 sm:$0xff]  }
 0x1eb   :  { %3010 = vmatpush1.bf16.msra.mxu0 %v4803_v0  ;;  %3092 = vmatpush1.bf16.msra.mxu1 %v4806_v1  ;;  %v4866_v0 = vld [vmem:[%s6515_s3 + $0x220] ss:$24 sps:$4 sm:$0xff]   ;;  %v4871_v1 = vld [vmem:[%s6515_s3 + $0x254] ss:$24 sps:$4 sm:$0xff]  }
 0x1ec   :  { %3011 = vmatprep.subr.bf16.mxu0 %v4811_v2  ;;  %3093 = vmatprep.subr.bf16.mxu1 %v4814_v3  ;;  %v4869_v2 = vld [vmem:[%s6515_s3 + $0x250] ss:$24 sps:$4 sm:$0xff]   ;;  %v4874_v3 = vld [vmem:[%s6515_s3 + $0x284] ss:$24 sps:$4 sm:$0xff]  }
 0x1ef   :  { %3012 = vmatpush1.bf16.msra.mxu0 %v4809_v4  ;;  %3094 = vmatpush1.bf16.msra.mxu1 %v4812_v5  ;;  %v4872_v4 = vld [vmem:[%s6515_s3 + $0x280] ss:$24 sps:$4 sm:$0xff]   ;;  %v4877_v5 = vld [vmem:[%s6515_s3 + $0x2b4] ss:$24 sps:$4 sm:$0xff]  }
 0x1f0   :  { %3013 = vmatprep.subr.bf16.mxu0 %v4817_v7  ;;  %3095 = vmatprep.subr.bf16.mxu1 %v4820_v8  ;;  %v4875_v7 = vld [vmem:[%s6515_s3 + $0x2b0] ss:$24 sps:$4 sm:$0xff]   ;;  %v4880_v8 = vld [vmem:[%s6515_s3 + $0x2e4] ss:$24 sps:$4 sm:$0xff]  }
 0x1f3   :  { %3014 = vmatpush1.bf16.msra.mxu0 %v4815_v9  ;;  %3096 = vmatpush1.bf16.msra.mxu1 %v4818_v10  ;;  %v4878_v9 = vld [vmem:[%s6515_s3 + $0x2e0] ss:$24 sps:$4 sm:$0xff]   ;;  %v4883_v10 = vld [vmem:[%s6515_s3 + $0x314] ss:$24 sps:$4 sm:$0xff]  }
 0x1f4   :  { %3015 = vmatprep.subr.bf16.mxu0 %v4823_v13  ;;  %3097 = vmatprep.subr.bf16.mxu1 %v4826_v15  ;;  %v4886_v13 = vld [vmem:[%s6515_s3 + $0x344] ss:$24 sps:$4 sm:$0xff]   ;;  %v4884_v15 = vld [vmem:[%s6515_s3 + $0x340] ss:$24 sps:$4 sm:$0xff]  }
 0x1f7   :  { %3016 = vmatpush1.bf16.msra.mxu0 %v4821_v16  ;;  %3098 = vmatpush1.bf16.msra.mxu1 %v4824_v55  ;;  %v4889_v16 = vld [vmem:[%s6515_s3 + $0x374] ss:$24 sps:$4 sm:$0xff]   ;;  %v4887_v55 = vld [vmem:[%s6515_s3 + $0x370] ss:$24 sps:$4 sm:$0xff]  }
 0x1f8   :  { %3017 = vmatprep.subr.bf16.mxu0 %v4829_v20  ;;  %3099 = vmatprep.subr.bf16.mxu1 %v4832_v21  ;;  %v4893_v20 = vld [vmem:[%s6515_s3 + $0x3d0] ss:$24 sps:$4 sm:$0xff]   ;;  %v4898_v21 = vld [vmem:[%s6515_s3 + $0x404] ss:$24 sps:$4 sm:$0xff]  }
 0x1fb   :  { %3018 = vmatpush1.bf16.msra.mxu0 %v4827_v22  ;;  %3100 = vmatpush1.bf16.msra.mxu1 %v4830_v62  ;;  %v4896_v22 = vld [vmem:[%s6515_s3 + $0x400] ss:$24 sps:$4 sm:$0xff]   ;;  %v4941_v62 = vld [vmem:[%s6517_s5 + $0x70] sm:$0xff]  }
 0x1fc   :  { %3110 = vmatprep.subr.bf16.mxu0 %v4835_v23  ;;  %4192 = vmatprep.subr.bf16.mxu1 %v4929_v29  ;;  %v4942_v23 = vld [vmem:[%s6517_s5 + $0x30] sm:$0xff]   ;;  %v4902_v29 = vld [vmem:[%s6515_s3 + $0x460] ss:$24 sps:$4 sm:$0xff]  }
 0x1fe   :  { %3020 = vmatmul.mubr.bf16.vlgmr.msra.gmra.mrb[4].mxu0 %v6148_v25  ;;  %3102 = vmatmul.mubr.bf16.vlgmr.msra.gmra.mrb[4].mxu1 %v6148_v25 }
 0x1ff   :  { %3111 = vmatpush1.bf16.msra.mxu0 %v4833_v24  ;;  %3142 = vmatprep.mubr.bf16.mxu0 %v5939_v11  ;;  %v4932_v11 = vld [vmem:[%s6517_s5 + $0x8] sm:$0xff]  }
 0x200   :  { %3112 = vmatprep.subr.bf16.mxu0 %v4838_v26  ;;  %4193 = vmatpush3.bf16.msra.mxu1 %v4930_v30  ;;  %v4899_v24 = vld [vmem:[%s6515_s3 + $0x430] ss:$24 sps:$4 sm:$0xff]   ;;  %v4943_v26 = vld [vmem:[%s6517_s5 + $0x78] sm:$0xff]   ;;  %v4945_v30 = vld [vmem:[%s6517_s5 + $0xc0] sm:$0xff]  }
 0x201   :  { %4194 = vmatprep.subr.bf16.mxu1 %v4931_v32  ;;  %v4905_v32 = vld [vmem:[%s6515_s3 + $0x490] ss:$24 sps:$4 sm:$0xff]  }
 0x203   :  { %3113 = vmatpush1.bf16.msra.mxu0 %v4836_v27  ;;  %v4904_v27 = vld [vmem:[%s6515_s3 + $0x464] ss:$24 sps:$4 sm:$0xff]  }
 0x204   :  { %3114 = vmatprep.subr.bf16.mxu0 %v4841_v28  ;;  %4195 = vmatpush3.bf16.msra.mxu1 %v4932_v11  ;;  %v4944_v28 = vld [vmem:[%s6517_s5 + $0x38] sm:$0xff]  }
 0x205   :  { %4196 = vmatprep.subr.bf16.mxu1 %v4933_v33  ;;  %v4910_v11 = vld [vmem:[%s6515_s3 + $0x4c4] ss:$24 sps:$4 sm:$0xff]   ;;  %v4908_v33 = vld [vmem:[%s6515_s3 + $0x4c0] ss:$24 sps:$4 sm:$0xff]  }
 0x207   :  { %3115 = vmatpush1.bf16.msra.mxu0 %v4839_v31  ;;  %v4907_v31 = vld [vmem:[%s6515_s3 + $0x494] ss:$24 sps:$4 sm:$0xff]  }
 0x208   :  { %3116 = vmatprep.subr.bf16.mxu0 %v4844_v34  ;;  %4197 = vmatpush3.bf16.msra.mxu1 %v4934_v36  ;;  %v4913_v34 = vld [vmem:[%s6515_s3 + $0x4f4] ss:$24 sps:$4 sm:$0xff]   ;;  %v4916_v36 = vld [vmem:[%s6515_s3 + $0x524] ss:$24 sps:$4 sm:$0xff]  }
 0x209   :  { %4198 = vmatprep.subr.bf16.mxu1 %v4935_v37  ;;  %v4914_v37 = vld [vmem:[%s6515_s3 + $0x520] ss:$24 sps:$4 sm:$0xff]  }
 0x20b   :  { %3117 = vmatpush1.bf16.msra.mxu0 %v4842_v35  ;;  %v4911_v35 = vld [vmem:[%s6515_s3 + $0x4f0] ss:$24 sps:$4 sm:$0xff]  }
 0x20c   :  { %3118 = vmatprep.subr.bf16.mxu0 %v4847_v38  ;;  %4199 = vmatpush3.bf16.msra.mxu1 %v4936_v41  ;;  %v4919_v38 = vld [vmem:[%s6515_s3 + $0x554] ss:$24 sps:$4 sm:$0xff]   ;;  %v4920_v41 = vld [vmem:[%s6515_s3 + $0x580] ss:$24 sps:$4 sm:$0xff]  }
 0x20d   :  { %4200 = vmatprep.subr.bf16.mxu1 %v4937_v42  ;;  %v4925_v42 = vld [vmem:[%s6515_s3 + $0x5b4] ss:$24 sps:$4 sm:$0xff]  }
 0x20f   :  { %3119 = vmatpush1.bf16.msra.mxu0 %v4845_v39  ;;  %v4917_v39 = vld [vmem:[%s6515_s3 + $0x550] ss:$24 sps:$4 sm:$0xff]  }
 0x210   :  { %3120 = vmatprep.subr.bf16.mxu0 %v4850_v40  ;;  %4201 = vmatpush3.bf16.msra.mxu1 %v4938_v43  ;;  %v4922_v40 = vld [vmem:[%s6515_s3 + $0x584] ss:$24 sps:$4 sm:$0xff]   ;;  %v4923_v43 = vld [vmem:[%s6515_s3 + $0x5b0] ss:$24 sps:$4 sm:$0xff]  }
 0x211   :  { %4202 = vmatprep.subr.bf16.mxu1 %v4939_v45  ;;  %v4926_v45 = vld [vmem:[%s6515_s3 + $0x5e0] ss:$24 sps:$4 sm:$0xff]  }
 0x213   :  { %3121 = vmatpush1.bf16.msra.mxu0 %v4848_v44  ;;  %v4928_v44 = vld [vmem:[%s6515_s3 + $0x5e4] ss:$24 sps:$4 sm:$0xff]  }
 0x214   :  { %3122 = vmatprep.subr.bf16.mxu0 %v4853_v46  ;;  %4203 = vmatpush3.bf16.msra.mxu1 %v4940_v47  ;;  %v6396_v46 = vld [vmem:[%s6518_s4] sm:$0x3f] }
 0x215   :  { %4204 = vmatprep.subr.bf16.mxu1 %v4941_v62  ;;  %v1959_v47 = vrot.slane %v6396_v46, %v263_v54 }
 0x217   :  { %3123 = vmatpush1.bf16.msra.mxu0 %v4851_v49  ;;  %v1963_v49 = vrot.slane %v6396_v46, %v267_v56  ;;  %v4946_v56 = vld [vmem:[%s6517_s5 + $0x80] sm:$0xff]  }
 0x218   :  { %3124 = vmatprep.subr.bf16.mxu0 %v4856_v50  ;;  %4205 = vmatpush3.bf16.msra.mxu1 %v4942_v23  ;;  %v1971_v50 = vrot.slane %v6396_v46, %v275_v57  ;;  %v4962_v23 = vld [vmem:[%s6517_s5 + $0x100] sm:$0xff]  }
 0x219   :  { %4206 = vmatprep.subr.bf16.mxu1 %v4943_v26  ;;  %v4963_v26 = vld [vmem:[%s6517_s5 + $0x148] sm:$0xff]  }
 0x21b   :  { %3125 = vmatpush1.bf16.msra.mxu0 %v4854_v51 }
 0x21c   :  { %3126 = vmatprep.subr.bf16.mxu0 %v4859_v52  ;;  %4207 = vmatpush3.bf16.msra.mxu1 %v4944_v28  ;;  %v4965_v28 = vld [vmem:[%s6517_s5 + $0x150] sm:$0xff]  }
 0x21d   :  { %4214 = vmatprep.subr.bf16.mxu1 %v4945_v30  ;;  %v4967_v30 = vld [vmem:[%s6517_s5 + $0x158] sm:$0xff]  }
 0x21f   :  { %3127 = vmatpush1.bf16.msra.mxu0 %v4857_v48 }
 0x220   :  { %3128 = vmatprep.subr.bf16.mxu0 %v4862_v58 }
 0x223   :  { %3129 = vmatpush1.bf16.msra.mxu0 %v4860_v59 }
 0x224   :  { %3130 = vmatprep.subr.bf16.mxu0 %v4865_v60 }
 0x227   :  { %3131 = vmatpush1.bf16.msra.mxu0 %v4863_v61 }
 0x228   :  { %3132 = vmatprep.subr.bf16.mxu0 %v4868_v63 }
 0x22b   :  { %3133 = vmatpush1.bf16.msra.mxu0 %v4866_v0 }
 0x22c   :  { %3134 = vmatprep.subr.bf16.mxu0 %v4871_v1 }
 0x22f   :  { %3135 = vmatpush1.bf16.msra.mxu0 %v4869_v2 }
 0x230   :  { %3136 = vmatprep.subr.bf16.mxu0 %v4874_v3 }
 0x233   :  { %3137 = vmatpush1.bf16.msra.mxu0 %v4872_v4 }
 0x234   :  { %3138 = vmatprep.subr.bf16.mxu0 %v4877_v5  ;;  %v4947_v5 = vld [vmem:[%s6517_s5 + $0xc8] sm:$0xff]  }
 0x237   :  { %3139 = vmatpush1.bf16.msra.mxu0 %v4875_v7 }
 0x238   :  { %3140 = vmatprep.subr.bf16.mxu0 %v4880_v8  ;;  %v4948_v8 = vld [vmem:[%s6517_s5 + $0x88] sm:$0xff]  }
 0x23b   :  { %3141 = vmatpush1.bf16.msra.mxu0 %v4878_v9  ;;  %v4949_v9 = vld [vmem:[%s6517_s5 + $0xd0] sm:$0xff]  }
 0x23c   :  { %3151 = vmatprep.subr.bf16.mxu0 %v4883_v10  ;;  %v4950_v10 = vld [vmem:[%s6517_s5 + $0x90] sm:$0xff]  }
 0x23e   :  { %3143 = vmatmul.mubr.bf16.vlgmr.msra.gmra.mrb[8].mxu0 %v5947_v14  ;;  %v4892_v14 = vld [vmem:[%s6515_s3 + $0x3a4] ss:$24 sps:$4 sm:$0xff]  }
 0x23f   :  { %3152 = vmatpush1.bf16.msra.mxu0 %v4881_v12  ;;  %3183 = vmatprep.mubr.bf16.mxu0 %v5957_v18  ;;  %v4890_v18 = vld [vmem:[%s6515_s3 + $0x3a0] ss:$24 sps:$4 sm:$0xff]  }
 0x240   :  { %3153 = vmatprep.subr.bf16.mxu0 %v4886_v13  ;;  %v4951_v12 = vld [vmem:[%s6517_s5 + $0xd8] sm:$0xff]  }
 0x241   :  { %v4952_v13 = vld [vmem:[%s6517_s5 + $0x98] sm:$0xff]  }
 0x243   :  { %3154 = vmatpush1.bf16.msra.mxu0 %v4884_v15  ;;  %v4953_v15 = vld [vmem:[%s6517_s5 + $0xe0] sm:$0xff]  }
 0x244   :  { %3155 = vmatprep.subr.bf16.mxu0 %v4889_v16  ;;  %v4954_v16 = vld [vmem:[%s6517_s5 + $0xa0] sm:$0xff]  }
 0x247   :  { %3156 = vmatpush1.bf16.msra.mxu0 %v4887_v55  ;;  %v4955_v55 = vld [vmem:[%s6517_s5 + $0xe8] sm:$0xff]  }
 0x248   :  { %3157 = vmatprep.subr.bf16.mxu0 %v4892_v14  ;;  %v4956_v14 = vld [vmem:[%s6517_s5 + $0xa8] sm:$0xff]  }
 0x24b   :  { %3158 = vmatpush1.bf16.msra.mxu0 %v4890_v18  ;;  %v1967_v18 = vrot.slane %v6396_v46, %v271_v6  ;;  %v4960_v6 = vld [vmem:[%s6517_s5 + $0xb8] sm:$0xff]  }
 0x24c   :  { %3159 = vmatprep.subr.bf16.mxu0 %v4895_v19  ;;  %v4957_v19 = vld [vmem:[%s6517_s5 + $0xf0] sm:$0xff]  }
 0x24f   :  { %3160 = vmatpush1.bf16.msra.mxu0 %v4893_v20  ;;  %v4958_v20 = vld [vmem:[%s6517_s5 + $0xb0] sm:$0xff]  }
 0x250   :  { %3161 = vmatprep.subr.bf16.mxu0 %v4898_v21 }
 0x253   :  { %3162 = vmatpush1.bf16.msra.mxu0 %v4896_v22  ;;  %v4959_v22 = vld [vmem:[%s6517_s5 + $0xf8] sm:$0xff]  }
 0x254   :  { %3163 = vmatprep.subr.bf16.mxu0 %v4901_v17  ;;  %v4961_v17 = vld [vmem:[%s6517_s5 + $0x140] sm:$0xff]  }
 0x257   :  { %3164 = vmatpush1.bf16.msra.mxu0 %v4899_v24 }
 0x258   :  { %3165 = vmatprep.subr.bf16.mxu0 %v4904_v27  ;;  %v4964_v27 = vld [vmem:[%s6517_s5 + $0x108] sm:$0xff]  }
 0x25b   :  { %3166 = vmatpush1.bf16.msra.mxu0 %v4902_v29  ;;  %v4966_v29 = vld [vmem:[%s6517_s5 + $0x110] sm:$0xff]  }
 0x25c   :  { %3167 = vmatprep.subr.bf16.mxu0 %v4907_v31  ;;  %v4968_v31 = vld [vmem:[%s6517_s5 + $0x118] sm:$0xff]  }
 0x25f   :  { %3168 = vmatpush1.bf16.msra.mxu0 %v4905_v32  ;;  %v4969_v32 = vld [vmem:[%s6517_s5 + $0x160] sm:$0xff]  }
 0x260   :  { %3169 = vmatprep.subr.bf16.mxu0 %v4910_v11  ;;  %v4970_v11 = vld [vmem:[%s6517_s5 + $0x120] sm:$0xff]  }
 0x263   :  { %3170 = vmatpush1.bf16.msra.mxu0 %v4908_v33  ;;  %v4971_v33 = vld [vmem:[%s6517_s5 + $0x168] sm:$0xff]  }
 0x264   :  { %3171 = vmatprep.subr.bf16.mxu0 %v4913_v34  ;;  %v4972_v34 = vld [vmem:[%s6517_s5 + $0x128] sm:$0xff]  }
 0x267   :  { %3172 = vmatpush1.bf16.msra.mxu0 %v4911_v35  ;;  %v4973_v35 = vld [vmem:[%s6517_s5 + $0x170] sm:$0xff]  }
 0x268   :  { %3173 = vmatprep.subr.bf16.mxu0 %v4916_v36  ;;  %v4974_v36 = vld [vmem:[%s6517_s5 + $0x130] sm:$0xff]  }
 0x26b   :  { %3174 = vmatpush1.bf16.msra.mxu0 %v4914_v37  ;;  %v4975_v37 = vld [vmem:[%s6517_s5 + $0x178] sm:$0xff]  }
 0x26c   :  { %3175 = vmatprep.subr.bf16.mxu0 %v4919_v38  ;;  %v4976_v38 = vld [vmem:[%s6517_s5 + $0x138] sm:$0xff]  }
 0x26f   :  { %3176 = vmatpush1.bf16.msra.mxu0 %v4917_v39  ;;  %v1974_v39 = vsub.s32 4, %v5918_v53 }
 0x270   :  { %3177 = vmatprep.subr.bf16.mxu0 %v4922_v40  ;;  %v1978_v40 = vsub.s32 5, %v5918_v53 }
 0x273   :  { %3178 = vmatpush1.bf16.msra.mxu0 %v4920_v41  ;;  %v1975_v41 = vrot.slane %v6396_v46, %v1974_v39 }
 0x274   :  { %3179 = vmatprep.subr.bf16.mxu0 %v4925_v42  ;;  %v1979_v42 = vrot.slane %v6396_v46, %v1978_v40  ;;  %v4143_v46 = vld [vmem:[%s6519_s6] ss:$0 sm:$0xff] }
 0x277   :  { %3180 = vmatpush1.bf16.msra.mxu0 %v4923_v43 }
 0x278   :  { %3181 = vmatprep.subr.bf16.mxu0 %v4928_v44 }
 0x27b   :  { %3182 = vmatpush1.bf16.msra.mxu0 %v4926_v45 }
 0x27e   :  { %3184 = vmatmul.mubr.bf16.vlgmr.msra.gmra.mrb[8].mxu0 %v6148_v25 }
 0x2d1   :  { %v3021_v51 = vpop.f32.mrb[4].mxu0  ;;  %v3103_v52 = vpop.f32.mrb[4].mxu1 }
 0x2d2   :  { %v4262_v25 = vadd.f32 %v3021_v51, %v1959_v47  ;;  %v3023_v48 = vpop.f32.mrb[5].mxu0  ;;  %v3105_v58 = vpop.f32.mrb[5].mxu1  ;;  %v4264_v21 = vadd.f32 %v3103_v52, %v1967_v18 }
 0x2d3   :  { %v4263_v59 = vadd.f32 %v3023_v48, %v1963_v49  ;;  %v4265_v60 = vadd.f32 %v3105_v58, %v1971_v50  ;;  %v3025_v61 = vpop.f32.mrb[6].mxu0  ;;  %v3107_v63 = vpop.f32.mrb[6].mxu1 }
 0x2d4   :  { %v3192_v0 = vmax.f32 %v4262_v25, 0.0  ;;  %v3026_v1 = vpop.f32.mrb[7].mxu0  ;;  %v3108_v54 = vpop.f32.mrb[7].mxu1  ;;  %v3194_v62 = vmax.f32 %v4264_v21, 0.0 }
 0x2d5   :  { %v3193_v2 = vmax.f32 %v4263_v59, 0.0  ;;  %v3195_v3 = vmax.f32 %v4265_v60, 0.0 }
 0x2d6   :  { %v3198_v57 = vpack.c.bf16 %v3192_v0, %v3192_v0  ;;  %v3200_v24 = vpack.c.bf16 %v3194_v62, %v3194_v62 }
 0x2d7   :  { %v3199_v4 = vpack.c.bf16 %v3193_v2, %v3193_v2  ;;  %v3201_v7 = vpack.c.bf16 %v3195_v3, %v3195_v3 }
 0x2d9   :  { %3627 = vmatprep.mubr.bf16.mxu1 %v3199_v4 }
 0x2da   :  { %3628 = vmatmul.mubr.bf16.vlgmr.msra.gmra.mrb[8].mxu1 %v3198_v57 }
 0x2db   :  { %4215 = vmatpush3.bf16.msra.mxu1 %v4946_v56  ;;  %3667 = vmatprep.mubr.bf16.mxu1 %v3201_v7 }
 0x2dc   :  { %4216 = vmatprep.subr.bf16.mxu1 %v4947_v5 }
 0x2df   :  { %4217 = vmatpush3.bf16.msra.mxu1 %v4948_v8 }
 0x2e0   :  { %4218 = vmatprep.subr.bf16.mxu1 %v4949_v9 }
 0x2e3   :  { %4219 = vmatpush3.bf16.msra.mxu1 %v4950_v10 }
 0x2e4   :  { %4220 = vmatprep.subr.bf16.mxu1 %v4951_v12 }
 0x2e7   :  { %4221 = vmatpush3.bf16.msra.mxu1 %v4952_v13 }
 0x2e8   :  { %4222 = vmatprep.subr.bf16.mxu1 %v4953_v15 }
 0x2eb   :  { %4223 = vmatpush3.bf16.msra.mxu1 %v4954_v16 }
 0x2ec   :  { %4224 = vmatprep.subr.bf16.mxu1 %v4955_v55 }
 0x2ef   :  { %4225 = vmatpush3.bf16.msra.mxu1 %v4956_v14 }
 0x2f0   :  { %4226 = vmatprep.subr.bf16.mxu1 %v4957_v19 }
 0x2f3   :  { %4227 = vmatpush3.bf16.msra.mxu1 %v4958_v20 }
 0x2f4   :  { %4228 = vmatprep.subr.bf16.mxu1 %v4959_v22 }
 0x2f7   :  { %4229 = vmatpush3.bf16.msra.mxu1 %v4960_v6 }
 0x2f8   :  { %4236 = vmatprep.subr.bf16.mxu1 %v4961_v17 }
 0x2fa   :  { %3668 = vmatmul.mubr.bf16.vlgmr.msra.gmra.mrb[12].mxu1 %v3200_v24 }
 0x2fb   :  { %4237 = vmatpush3.bf16.msra.mxu1 %v4962_v23 }
 0x2fc   :  { %4238 = vmatprep.subr.bf16.mxu1 %v4963_v26 }
 0x2ff   :  { %4239 = vmatpush3.bf16.msra.mxu1 %v4964_v27 }
 0x300   :  { %4240 = vmatprep.subr.bf16.mxu1 %v4965_v28 }
 0x303   :  { %4241 = vmatpush3.bf16.msra.mxu1 %v4966_v29 }
 0x304   :  { %4242 = vmatprep.subr.bf16.mxu1 %v4967_v30 }
 0x307   :  { %4243 = vmatpush3.bf16.msra.mxu1 %v4968_v31 }
 0x308   :  { %4244 = vmatprep.subr.bf16.mxu1 %v4969_v32 }
 0x30b   :  { %4245 = vmatpush3.bf16.msra.mxu1 %v4970_v11 }
 0x30c   :  { %4246 = vmatprep.subr.bf16.mxu1 %v4971_v33 }
 0x30f   :  { %4247 = vmatpush3.bf16.msra.mxu1 %v4972_v34 }
 0x310   :  { %4248 = vmatprep.subr.bf16.mxu1 %v4973_v35 }
 0x313   :  { %4249 = vmatpush3.bf16.msra.mxu1 %v4974_v36 }
 0x314   :  { %4250 = vmatprep.subr.bf16.mxu1 %v4975_v37 }
 0x317   :  { %4251 = vmatpush3.bf16.msra.mxu1 %v4976_v38 }
 0x351   :  { %v3185_v43 = vpop.f32.mrb[8].mxu0 }
 0x352   :  { %v4266_v44 = vadd.f32 %v3185_v43, %v1975_v41  ;;  %v3187_v45 = vpop.f32.mrb[9].mxu0 }
 0x353   :  { %v4267_v47 = vadd.f32 %v3187_v45, %v1979_v42  ;;  %v3189_v49 = vpop.f32.mrb[10].mxu0 }
 0x354   :  { %v3196_v50 = vmax.f32 %v4266_v44, 0.0  ;;  %v3190_v51 = vpop.f32.mrb[11].mxu0 }
 0x355   :  { %v3197_v52 = vmax.f32 %v4267_v47, 0.0 }
 0x356   :  { %v3202_v48 = vpack.c.bf16 %v3196_v50, %v3196_v50 }
 0x357   :  { %v3203_v25 = vpack.c.bf16 %v3197_v52, %v3197_v52 }
 0x359   :  { %3707 = vmatprep.mubr.bf16.mxu1 %v3203_v25 }
 0x35a   :  { %3708 = vmatmul.mubr.bf16.vlgmr.msra.gmra.mrb[16].mxu1 %v3202_v48 }
 0x3ad   :  { %v4208_v58 = vpop.f32.mrb[8].mxu1 }
 0x3ae   :  { %v4209_v59 = vpop.f32.mrb[9].mxu1 }
 0x3af   :  { %v4210_v60 = vadd.f32 %v4209_v59, %v4208_v58  ;;  %v4211_v53 = vpop.f32.mrb[10].mxu1 }
 0x3b0   :  { %v4212_v61 = vpop.f32.mrb[11].mxu1 }
 0x3b1   :  { %v3630_v1 = vadd.f32 %v4210_v60, %v4143_v46 }
 0x3cd   :  { %v4230_v63 = vpop.f32.mrb[12].mxu1 }
 0x3ce   :  { %v4231_v0 = vpop.f32.mrb[13].mxu1 }
 0x3cf   :  { %v4232_v54 = vadd.f32 %v4231_v0, %v4230_v63  ;;  %v4233_v2 = vpop.f32.mrb[14].mxu1 }
 0x3d0   :  { %v4234_v3 = vpop.f32.mrb[15].mxu1 }
 0x3d1   :  { %v3670_v4 = vadd.f32 %v4232_v54, %v3630_v1 }
 0x42d   :  { %v4252_v56 = vpop.f32.mrb[16].mxu1 }
 0x42e   :  { %v4253_v57 = vpop.f32.mrb[17].mxu1 }
 0x42f   :  { %v4254_v5 = vadd.f32 %v4253_v57, %v4252_v56  ;;  %v4255_v7 = vpop.f32.mrb[18].mxu1 }
 0x430   :  { %v4256_v8 = vpop.f32.mrb[19].mxu1 }
 0x431   :  { %v3710_v9 = vadd.f32 %v4254_v5, %v3670_v4 }
 0x433   :  { %3715 = vst [vmem:[%s6520_s7] sm:$0xff] %v3710_v9 }

</bundles_post_ra>
